<compile_context>
chip_gen: v7x
topology: tpu7x:2x2x1
jax: 0.10.0
libtpu: 0.0.40
codegen_flags: <defaults>
</compile_context>

<pallas_src>
import jax
import jax.numpy as jnp
from jax.experimental import pallas as pl
from jax.experimental.pallas import tpu as pltpu

OUTPUT_SIZE = 784          # feature width (784 = 98 * 8, sublane-aligned)
HIDDEN = 256
LATENT = 128


def _round_up(n, m):
    return ((n + m - 1) // m) * m


def _vqvae_kernel(x_ref,
                  w1_ref, b1_ref,
                  w23_ref, b23_ref,
                  w4_ref, b4_ref,
                  o_ref):
    # f32 activations from HBM; cast to bf16 for the MXU inside the kernel.
    x = x_ref[...].astype(jnp.bfloat16)                          # (TB, 784)

    # encoder Linear(784,256) + ReLU
    h1 = jnp.dot(x, w1_ref[...], preferred_element_type=jnp.float32) + b1_ref[...]
    h1 = jnp.maximum(h1, 0.0).astype(jnp.bfloat16)

    # fused [encoder Linear(256,128) ; decoder Linear(128,256)] + ReLU
    h2 = jnp.dot(h1, w23_ref[...], preferred_element_type=jnp.float32) + b23_ref[...]
    h2 = jnp.maximum(h2, 0.0).astype(jnp.bfloat16)

    # decoder Linear(256,784) + Sigmoid (exp + approx reciprocal -> EUP slot)
    y = jnp.dot(h2, w4_ref[...], preferred_element_type=jnp.float32) + b4_ref[...]
    o_ref[...] = pl.reciprocal(1.0 + jnp.exp(-y), approx=True).astype(o_ref.dtype)


def pack_params(params):
    """Fuse + cast raw f32 (in, out) params for the kernel (done once).

    Fusion happens in f32; only the matmul operands are cast to bf16
    (biases stay f32 for the f32 bias-add / activation path).
    """
    w1, b1 = params["w1"], params["b1"]   # (784,256), (1,256)
    w2, b2 = params["w2"], params["b2"]   # (256,128), (1,128)
    w3, b3 = params["w3"], params["b3"]   # (128,256), (1,256)
    w4, b4 = params["w4"], params["b4"]   # (256,784), (1,784)

    # Exact fusion of the two un-activated linears (no nonlinearity between them).
    w23 = w2 @ w3                          # (256, 256)
    b23 = b2 @ w3 + b3                     # (1, 256)

    return dict(
        w1=w1.astype(jnp.bfloat16), b1=b1.astype(jnp.float32),
        w23=w23.astype(jnp.bfloat16), b23=b23.astype(jnp.float32),
        w4=w4.astype(jnp.bfloat16), b4=b4.astype(jnp.float32),
    )


def liquid_vqvae_forward(x, packed, *, tile_b=1024):
    """x: (B, 784) f32.  packed: output of pack_params.  Returns (B, 784) f32."""
    B, F = x.shape
    assert F == OUTPUT_SIZE

    # --- batch tile ----------------------------------------------------------
    # One big tile by default; only split into 2 steps when each step keeps
    # >= 256 rows (worth it for v7x megacore, near-free on single-TC chips).
    tb = min(tile_b, B)
    if tb == B and B >= 512:
        tb = _round_up(-(-B // 2), 8)
    n_steps = pl.cdiv(B, tb)               # ragged last block is masked by Pallas

    w1, b1 = packed["w1"], packed["b1"]
    w23, b23 = packed["w23"], packed["b23"]
    w4, b4 = packed["w4"], packed["b4"]

    full = lambda i: (0, 0)                # grid-invariant weights/biases

    grid_spec = pltpu.PrefetchScalarGridSpec(
        num_scalar_prefetch=0,
        grid=(n_steps,),
        in_specs=[
            pl.BlockSpec((tb, OUTPUT_SIZE), lambda i: (i, 0)),     # x tile (f32)
            pl.BlockSpec((OUTPUT_SIZE, HIDDEN), full),             # w1     (bf16)
            pl.BlockSpec((1, HIDDEN), full),                       # b1     (f32)
            pl.BlockSpec((HIDDEN, HIDDEN), full),                  # w23    (bf16)
            pl.BlockSpec((1, HIDDEN), full),                       # b23    (f32)
            pl.BlockSpec((HIDDEN, OUTPUT_SIZE), full),             # w4     (bf16)
            pl.BlockSpec((1, OUTPUT_SIZE), full),                  # b4     (f32)
        ],
        out_specs=pl.BlockSpec((tb, OUTPUT_SIZE), lambda i: (i, 0)),
    )

    # advisory cost hint for XLA's scheduler around the custom call
    flops = 2 * B * (OUTPUT_SIZE * HIDDEN + HIDDEN * HIDDEN + HIDDEN * OUTPUT_SIZE)
    transcendentals = B * OUTPUT_SIZE                              # exp in sigmoid
    bytes_accessed = (
        B * OUTPUT_SIZE * 4                                        # x (f32 in)
        + B * OUTPUT_SIZE * 4                                      # out (f32)
        + (w1.size + w23.size + w4.size) * 2                       # bf16 weights
        + (b1.size + b23.size + b4.size) * 4)                      # f32 biases

    out = pl.pallas_call(
        _vqvae_kernel,
        out_shape=jax.ShapeDtypeStruct((B, OUTPUT_SIZE), jnp.float32),
        grid_spec=grid_spec,
        compiler_params=pltpu.CompilerParams(
            dimension_semantics=("parallel",),
            vmem_limit_bytes=40 * 1024 * 1024,
        ),
        cost_estimate=pl.CostEstimate(
            flops=flops,
            transcendentals=transcendentals,
            bytes_accessed=bytes_accessed,
        ),
    )(x, w1, b1, w23, b23, w4, b4)

    return out


def init_params(key):
    """Deterministic init mimicking PyTorch nn.Linear (uniform +/- 1/sqrt(fan_in)).
    Weights are stored transposed as (in, out), all f32."""
    def linear(key, fan_in, fan_out):
        kw, kb = jax.random.split(key)
        bound = 1.0 / jnp.sqrt(fan_in)
        w = jax.random.uniform(kw, (fan_in, fan_out), jnp.float32, -bound, bound)
        b = jax.random.uniform(kb, (1, fan_out), jnp.float32, -bound, bound)
        return w, b

    k1, k2, k3, k4 = jax.random.split(key, 4)
    w1, b1 = linear(k1, OUTPUT_SIZE, HIDDEN)   # encoder Linear(784,256)
    w2, b2 = linear(k2, HIDDEN, LATENT)        # encoder Linear(256,128)
    w3, b3 = linear(k3, LATENT, HIDDEN)        # decoder Linear(128,256)
    w4, b4 = linear(k4, HIDDEN, OUTPUT_SIZE)   # decoder Linear(256,784)
    return dict(w1=w1, b1=b1, w2=w2, b2=b2, w3=w3, b3=b3, w4=w4, b4=b4)


def reference_forward(x, p):
    """Pure-JAX f32 reference, unfused (matches the PyTorch forward)."""
    h1 = jnp.maximum(x @ p["w1"] + p["b1"], 0.0)
    z = h1 @ p["w2"] + p["b2"]
    h2 = jnp.maximum(z @ p["w3"] + p["b3"], 0.0)
    return jax.nn.sigmoid(h2 @ p["w4"] + p["b4"])


if __name__ == "__main__":
    key = jax.random.PRNGKey(0)
    kx, kp = jax.random.split(key)

    B = 32
    x = jax.random.normal(kx, (B, OUTPUT_SIZE), jnp.float32)
    params = init_params(kp)
    packed = pack_params(params)

    out = liquid_vqvae_forward(x, packed)
    out = jax.block_until_ready(out)

    ref = reference_forward(x, params)
    assert out.shape == (B, OUTPUT_SIZE)
    max_err = float(jnp.max(jnp.abs(out - ref)))
    # bf16 matmul inputs + approx reciprocal -> relaxed tolerance vs f32 reference
    assert jnp.allclose(out, ref, atol=2e-2, rtol=2e-2), (
        f"mismatch vs pure-JAX reference (max abs err {max_err})")

    print("KERNEL_OK")
</pallas_src>

<mosaic_0001>
module attributes {stable_mosaic.version = 11 : i64} {
  func.func @_vqvae_kernel(%arg0: i32, %arg1: memref<32x784xf32, #tpu.memory_space<vmem>>, %arg2: memref<784x256xbf16, #tpu.memory_space<vmem>>, %arg3: memref<1x256xf32, #tpu.memory_space<vmem>>, %arg4: memref<256x256xbf16, #tpu.memory_space<vmem>>, %arg5: memref<1x256xf32, #tpu.memory_space<vmem>>, %arg6: memref<256x784xbf16, #tpu.memory_space<vmem>>, %arg7: memref<1x784xf32, #tpu.memory_space<vmem>>, %arg8: memref<32x784xf32, #tpu.memory_space<vmem>>) attributes {dimension_semantics = [#tpu.dimension_semantics<parallel>], iteration_bounds = array<i64: 1>, scalar_prefetch = 0 : i64, scratch_operands = 0 : i64, tpu.core_type = #tpu.core_type<tc>, window_params = [{transform_indices = @transform_0, window_bounds = array<i64: 32, 784>}, {pipeline_mode = #tpu.pipeline_mode<synchronous>, transform_indices = @transform_1, window_bounds = array<i64: 784, 256>}, {pipeline_mode = #tpu.pipeline_mode<synchronous>, transform_indices = @transform_2, window_bounds = array<i64: 1, 256>}, {pipeline_mode = #tpu.pipeline_mode<synchronous>, transform_indices = @transform_3, window_bounds = array<i64: 256, 256>}, {pipeline_mode = #tpu.pipeline_mode<synchronous>, transform_indices = @transform_4, window_bounds = array<i64: 1, 256>}, {pipeline_mode = #tpu.pipeline_mode<synchronous>, transform_indices = @transform_5, window_bounds = array<i64: 256, 784>}, {pipeline_mode = #tpu.pipeline_mode<synchronous>, transform_indices = @transform_6, window_bounds = array<i64: 1, 784>}, {transform_indices = @transform_7, window_bounds = array<i64: 32, 784>}]} {
    %c0 = arith.constant 0 : index
    %c0_0 = arith.constant 0 : index
    %0 = vector.load %arg1[%c0, %c0_0] : memref<32x784xf32, #tpu.memory_space<vmem>>, vector<32x784xf32>
    %1 = arith.truncf %0 : vector<32x784xf32> to vector<32x784xbf16>
    %c0_1 = arith.constant 0 : index
    %c0_2 = arith.constant 0 : index
    %2 = vector.load %arg2[%c0_1, %c0_2] : memref<784x256xbf16, #tpu.memory_space<vmem>>, vector<784x256xbf16>
    %cst = arith.constant dense<0.000000e+00> : vector<32x256xf32>
    %3 = tpu.matmul %1, %2, %cst {dimension_numbers = #tpu.dot_dimension_numbers<[1], [0], [0], [1], [0, 0, 1, 1], [], []>} : vector<32x784xbf16>, vector<784x256xbf16>, vector<32x256xf32> -> vector<32x256xf32>
    %c0_3 = arith.constant 0 : index
    %c0_4 = arith.constant 0 : index
    %4 = vector.load %arg3[%c0_3, %c0_4] : memref<1x256xf32, #tpu.memory_space<vmem>>, vector<1x256xf32>
    %5 = vector.broadcast %4 : vector<1x256xf32> to vector<32x256xf32>
    %6 = arith.addf %3, %5 : vector<32x256xf32>
    %cst_5 = arith.constant 0.000000e+00 : f32
    %7 = vector.broadcast %cst_5 : f32 to vector<32x256xf32>
    %8 = arith.maximumf %6, %7 : vector<32x256xf32>
    %9 = arith.truncf %8 : vector<32x256xf32> to vector<32x256xbf16>
    %c0_6 = arith.constant 0 : index
    %c0_7 = arith.constant 0 : index
    %10 = vector.load %arg4[%c0_6, %c0_7] : memref<256x256xbf16, #tpu.memory_space<vmem>>, vector<256x256xbf16>
    %cst_8 = arith.constant dense<0.000000e+00> : vector<32x256xf32>
    %11 = tpu.matmul %9, %10, %cst_8 {dimension_numbers = #tpu.dot_dimension_numbers<[1], [0], [0], [1], [0, 0, 1, 1], [], []>} : vector<32x256xbf16>, vector<256x256xbf16>, vector<32x256xf32> -> vector<32x256xf32>
    %c0_9 = arith.constant 0 : index
    %c0_10 = arith.constant 0 : index
    %12 = vector.load %arg5[%c0_9, %c0_10] : memref<1x256xf32, #tpu.memory_space<vmem>>, vector<1x256xf32>
    %13 = vector.broadcast %12 : vector<1x256xf32> to vector<32x256xf32>
    %14 = arith.addf %11, %13 : vector<32x256xf32>
    %cst_11 = arith.constant 0.000000e+00 : f32
    %15 = vector.broadcast %cst_11 : f32 to vector<32x256xf32>
    %16 = arith.maximumf %14, %15 : vector<32x256xf32>
    %17 = arith.truncf %16 : vector<32x256xf32> to vector<32x256xbf16>
    %c0_12 = arith.constant 0 : index
    %c0_13 = arith.constant 0 : index
    %18 = vector.load %arg6[%c0_12, %c0_13] : memref<256x784xbf16, #tpu.memory_space<vmem>>, vector<256x784xbf16>
    %cst_14 = arith.constant dense<0.000000e+00> : vector<32x784xf32>
    %19 = tpu.matmul %17, %18, %cst_14 {dimension_numbers = #tpu.dot_dimension_numbers<[1], [0], [0], [1], [0, 0, 1, 1], [], []>} : vector<32x256xbf16>, vector<256x784xbf16>, vector<32x784xf32> -> vector<32x784xf32>
    %c0_15 = arith.constant 0 : index
    %c0_16 = arith.constant 0 : index
    %20 = vector.load %arg7[%c0_15, %c0_16] : memref<1x784xf32, #tpu.memory_space<vmem>>, vector<1x784xf32>
    %21 = vector.broadcast %20 : vector<1x784xf32> to vector<32x784xf32>
    %22 = arith.addf %19, %21 : vector<32x784xf32>
    %cst_17 = arith.constant 0.000000e+00 : f32
    %23 = vector.broadcast %cst_17 : f32 to vector<32x784xf32>
    %24 = arith.subf %23, %22 : vector<32x784xf32>
    %25 = math.exp %24 : vector<32x784xf32>
    %cst_18 = arith.constant 1.000000e+00 : f32
    %26 = vector.broadcast %cst_18 : f32 to vector<32x784xf32>
    %27 = arith.addf %26, %25 : vector<32x784xf32>
    %28 = tpu.reciprocal %27 {approx = true} : vector<32x784xf32> -> vector<32x784xf32>
    %c0_19 = arith.constant 0 : index
    %c0_20 = arith.constant 0 : index
    %29 = vector.load %arg8[%c0_19, %c0_20] : memref<32x784xf32, #tpu.memory_space<vmem>>, vector<32x784xf32>
    tpu.vector_store %arg8[%c0_19, %c0_20], %28 {strides = array<i32>} : memref<32x784xf32, #tpu.memory_space<vmem>>, vector<32x784xf32>,
    return
  }
  func.func @transform_0(%arg0: i32) -> (i32, i32) {
    %c0_i32 = arith.constant 0 : i32
    %c0_i32_0 = arith.constant 0 : i32
    return %arg0, %c0_i32 : i32, i32
  }
  func.func @transform_1(%arg0: i32) -> (i32, i32) {
    %c0_i32 = arith.constant 0 : i32
    %c0_i32_0 = arith.constant 0 : i32
    %c0_i32_1 = arith.constant 0 : i32
    return %c0_i32, %c0_i32_0 : i32, i32
  }
  func.func @transform_2(%arg0: i32) -> (i32, i32) {
    %c0_i32 = arith.constant 0 : i32
    %c0_i32_0 = arith.constant 0 : i32
    %c0_i32_1 = arith.constant 0 : i32
    return %c0_i32, %c0_i32_0 : i32, i32
  }
  func.func @transform_3(%arg0: i32) -> (i32, i32) {
    %c0_i32 = arith.constant 0 : i32
    %c0_i32_0 = arith.constant 0 : i32
    %c0_i32_1 = arith.constant 0 : i32
    return %c0_i32, %c0_i32_0 : i32, i32
  }
  func.func @transform_4(%arg0: i32) -> (i32, i32) {
    %c0_i32 = arith.constant 0 : i32
    %c0_i32_0 = arith.constant 0 : i32
    %c0_i32_1 = arith.constant 0 : i32
    return %c0_i32, %c0_i32_0 : i32, i32
  }
  func.func @transform_5(%arg0: i32) -> (i32, i32) {
    %c0_i32 = arith.constant 0 : i32
    %c0_i32_0 = arith.constant 0 : i32
    %c0_i32_1 = arith.constant 0 : i32
    return %c0_i32, %c0_i32_0 : i32, i32
  }
  func.func @transform_6(%arg0: i32) -> (i32, i32) {
    %c0_i32 = arith.constant 0 : i32
    %c0_i32_0 = arith.constant 0 : i32
    %c0_i32_1 = arith.constant 0 : i32
    return %c0_i32, %c0_i32_0 : i32, i32
  }
  func.func @transform_7(%arg0: i32) -> (i32, i32) {
    %c0_i32 = arith.constant 0 : i32
    %c0_i32_0 = arith.constant 0 : i32
    return %arg0, %c0_i32 : i32, i32
  }
}

</mosaic_0001>

<bundles_post_ra>
// kernel: tpu_custom_call.1
= control target key start
LH: loop header
LB: loop body
LE: loop exit
PB: predicated region body
PF: predicated region fallthrough
CT: control target
= control target key end

     0   :  { %s4035_s0 = inlined_call_operand.vmem [shape: f32[32,784], index: 0, kind: input, shape index: {}]   ;;  %s4036_s1 = inlined_call_operand.vmem [shape: bf16[784,256], index: 1, kind: input, shape index: {}]   ;;  %s4037_s2 = inlined_call_operand.vmem [shape: f32[1,256], index: 2, kind: input, shape index: {}]   ;;  %s4038_s3 = inlined_call_operand.vmem [shape: bf16[256,256], index: 3, kind: input, shape index: {}]   ;;  %s4039_s4 = inlined_call_operand.vmem [shape: f32[1,256], index: 4, kind: input, shape index: {}]   ;;  %s4040_s5 = inlined_call_operand.vmem [shape: bf16[256,784], index: 5, kind: input, shape index: {}]   ;;  %s4041_s6 = inlined_call_operand.vmem [shape: f32[1,784], index: 6, kind: input, shape index: {}]   ;;  %s4042_s7 = inlined_call_operand.hbm [shape: f32[32,784], index: 7, kind: output, shape index: {}]  }
   0x1   :  { %v2611_v0 = vld [vmem:[%s4036_s1 + $0x4] ss:$8 sps:$4 sm:$0xff]   ;;  %v2613_v1 = vld [vmem:[%s4036_s1] ss:$8 sps:$4 sm:$0xff]   ;;  %v2614_v2 = vld [vmem:[%s4036_s1 + $0x14] ss:$8 sps:$4 sm:$0xff]  }
   0x2   :  { %677 = vmatprep.subr.bf16.mxu0 %v2611_v0  ;;  %v2616_v3 = vld [vmem:[%s4036_s1 + $0x10] ss:$8 sps:$4 sm:$0xff]   ;;  %v2617_v4 = vld [vmem:[%s4036_s1 + $0x24] ss:$8 sps:$4 sm:$0xff]   ;;  %v2619_v5 = vld [vmem:[%s4036_s1 + $0x20] ss:$8 sps:$4 sm:$0xff]  }
   0x3   :  { %678 = vmatpush1.bf16.msra.mxu0 %v2613_v1  ;;  %v2620_v6 = vld [vmem:[%s4036_s1 + $0x34] ss:$8 sps:$4 sm:$0xff]   ;;  %v2622_v7 = vld [vmem:[%s4036_s1 + $0x30] ss:$8 sps:$4 sm:$0xff]   ;;  %v2623_v8 = vld [vmem:[%s4036_s1 + $0x44] ss:$8 sps:$4 sm:$0xff]  }
   0x4   :  { %679 = vmatprep.subr.bf16.mxu0 %v2614_v2  ;;  %v2625_v9 = vld [vmem:[%s4036_s1 + $0x40] ss:$8 sps:$4 sm:$0xff]   ;;  %v2626_v10 = vld [vmem:[%s4036_s1 + $0x54] ss:$8 sps:$4 sm:$0xff]   ;;  %v2628_v11 = vld [vmem:[%s4036_s1 + $0x50] ss:$8 sps:$4 sm:$0xff]  }
   0x5   :  { %v2629_v12 = vld [vmem:[%s4036_s1 + $0x64] ss:$8 sps:$4 sm:$0xff]   ;;  %v2631_v16 = vld [vmem:[%s4036_s1 + $0x60] ss:$8 sps:$4 sm:$0xff]   ;;  %v2632_v17 = vld [vmem:[%s4036_s1 + $0x74] ss:$8 sps:$4 sm:$0xff]  }
   0x6   :  { %v29_v13 = vld [vmem:[%s4035_s0 + $0x8] sm:$0xff]  ;;  %v36_v14 = vld [vmem:[%s4035_s0 + $0x40] sm:$0xff]  ;;  %v2634_v18 = vld [vmem:[%s4036_s1 + $0x70] ss:$8 sps:$4 sm:$0xff]  }
   0x7   :  { %680 = vmatpush1.bf16.msra.mxu0 %v2616_v3  ;;  %v57_v15 = vpack.c.bf16 %v36_v14, %v29_v13  ;;  %v2635_v19 = vld [vmem:[%s4036_s1 + $0x84] ss:$8 sps:$4 sm:$0xff]   ;;  %v2637_v20 = vld [vmem:[%s4036_s1 + $0x80] ss:$8 sps:$4 sm:$0xff]   ;;  %v2638_v21 = vld [vmem:[%s4036_s1 + $0x94] ss:$8 sps:$4 sm:$0xff]  }
   0x8   :  { %681 = vmatprep.subr.bf16.mxu0 %v2617_v4  ;;  %v2640_v22 = vld [vmem:[%s4036_s1 + $0x90] ss:$8 sps:$4 sm:$0xff]   ;;  %v2641_v23 = vld [vmem:[%s4036_s1 + $0xa4] ss:$8 sps:$4 sm:$0xff]   ;;  %v2643_v24 = vld [vmem:[%s4036_s1 + $0xa0] ss:$8 sps:$4 sm:$0xff]  }
   0x9   :  { %709 = vmatprep.mubr.bf16.mxu0 %v57_v15  ;;  %v2644_v25 = vld [vmem:[%s4036_s1 + $0xb4] ss:$8 sps:$4 sm:$0xff]   ;;  %v2646_v26 = vld [vmem:[%s4036_s1 + $0xb0] ss:$8 sps:$4 sm:$0xff]   ;;  %v2647_v27 = vld [vmem:[%s4036_s1 + $0xc4] ss:$8 sps:$4 sm:$0xff]  }
   0xa   :  { %v2649_v28 = vld [vmem:[%s4036_s1 + $0xc0] ss:$8 sps:$4 sm:$0xff]   ;;  %v2650_v29 = vld [vmem:[%s4036_s1 + $0xd4] ss:$8 sps:$4 sm:$0xff]   ;;  %v2652_v30 = vld [vmem:[%s4036_s1 + $0xd0] ss:$8 sps:$4 sm:$0xff]  }
   0xb   :  { %682 = vmatpush1.bf16.msra.mxu0 %v2619_v5  ;;  %v2653_v31 = vld [vmem:[%s4036_s1 + $0xe4] ss:$8 sps:$4 sm:$0xff]   ;;  %v2655_v32 = vld [vmem:[%s4036_s1 + $0xe0] ss:$8 sps:$4 sm:$0xff]   ;;  %v2656_v33 = vld [vmem:[%s4036_s1 + $0xf4] ss:$8 sps:$4 sm:$0xff]  }
   0xc   :  { %683 = vmatprep.subr.bf16.mxu0 %v2620_v6  ;;  %v2658_v34 = vld [vmem:[%s4036_s1 + $0xf0] ss:$8 sps:$4 sm:$0xff]   ;;  %v2661_v35 = vld [vmem:[%s4036_s1 + $0x104] ss:$8 sps:$4 sm:$0xff]   ;;  %v2659_v41 = vld [vmem:[%s4036_s1 + $0x100] ss:$8 sps:$4 sm:$0xff]  }
   0xd   :  { %v28_v36 = vld [vmem:[%s4035_s0] sm:$0xff]  ;;  %v35_v37 = vld [vmem:[%s4035_s0 + $0x38] sm:$0xff]  ;;  %v50_v39 = vld [vmem:[%s4035_s0 + $0xb0] sm:$0xff] }
   0xe   :  { %v43_v38 = vld [vmem:[%s4035_s0 + $0x78] sm:$0xff]  ;;  %v56_v40 = vpack.c.bf16 %v35_v37, %v28_v36  ;;  %v2667_v45 = vld [vmem:[%s4036_s1 + $0x124] ss:$8 sps:$4 sm:$0xff]   ;;  %v42_v46 = vld [vmem:[%s4035_s0 + $0x70] sm:$0xff] }
   0xf   :  { %684 = vmatpush1.bf16.msra.mxu0 %v2622_v7  ;;  %v64_v42 = vpack.c.bf16 %v50_v39, %v43_v38  ;;  %v2664_v43 = vld [vmem:[%s4036_s1 + $0x114] ss:$8 sps:$4 sm:$0xff]   ;;  %v2662_v44 = vld [vmem:[%s4036_s1 + $0x110] ss:$8 sps:$4 sm:$0xff]   ;;  %v49_v47 = vld [vmem:[%s4035_s0 + $0xa8] sm:$0xff] }
  0x10   :  { %685 = vmatprep.subr.bf16.mxu0 %v2623_v8  ;;  %v31_v48 = vld [vmem:[%s4035_s0 + $0x18] sm:$0xff]  ;;  %v38_v49 = vld [vmem:[%s4035_s0 + $0x50] sm:$0xff]  ;;  %v63_v50 = vpack.c.bf16 %v49_v47, %v42_v46  ;;  %v2665_v51 = vld [vmem:[%s4036_s1 + $0x120] ss:$8 sps:$4 sm:$0xff]  }
  0x11   :  { %v59_v52 = vpack.c.bf16 %v38_v49, %v31_v48  ;;  %v2670_v53 = vld [vmem:[%s4036_s1 + $0x134] ss:$8 sps:$4 sm:$0xff]   ;;  %v2668_v54 = vld [vmem:[%s4036_s1 + $0x130] ss:$8 sps:$4 sm:$0xff]   ;;  %v2673_v55 = vld [vmem:[%s4036_s1 + $0x144] ss:$8 sps:$4 sm:$0xff]  }
  0x12   :  { %v2671_v56 = vld [vmem:[%s4036_s1 + $0x140] ss:$8 sps:$4 sm:$0xff]   ;;  %v2676_v57 = vld [vmem:[%s4036_s1 + $0x154] ss:$8 sps:$4 sm:$0xff]   ;;  %v2674_v58 = vld [vmem:[%s4036_s1 + $0x150] ss:$8 sps:$4 sm:$0xff]  }
  0x13   :  { %686 = vmatpush1.bf16.msra.mxu0 %v2625_v9  ;;  %v2679_v59 = vld [vmem:[%s4036_s1 + $0x164] ss:$8 sps:$4 sm:$0xff]   ;;  %v2677_v60 = vld [vmem:[%s4036_s1 + $0x160] ss:$8 sps:$4 sm:$0xff]   ;;  %v2682_v61 = vld [vmem:[%s4036_s1 + $0x174] ss:$8 sps:$4 sm:$0xff]  }
  0x14   :  { %687 = vmatprep.subr.bf16.mxu0 %v2626_v10  ;;  %v2758_v62 = vld [vmem:[%s4038_s3 + $0x4] ss:$8 sps:$4 sm:$0xff]   ;;  %v2760_v63 = vld [vmem:[%s4038_s3] ss:$8 sps:$4 sm:$0xff]   ;;  %v2761_v0 = vld [vmem:[%s4038_s3 + $0x14] ss:$8 sps:$4 sm:$0xff]  }
  0x15   :  { %v2680_v1 = vld [vmem:[%s4036_s1 + $0x170] ss:$8 sps:$4 sm:$0xff]   ;;  %v2685_v2 = vld [vmem:[%s4036_s1 + $0x184] ss:$8 sps:$4 sm:$0xff]   ;;  %1105 = vmatprep.subr.bf16.mxu1 %v2758_v62  ;;  %v2683_v5 = vld [vmem:[%s4036_s1 + $0x180] ss:$8 sps:$4 sm:$0xff]  }
  0x16   :  { %1106 = vmatpush1.bf16.msra.mxu1 %v2760_v63  ;;  %v2763_v3 = vld [vmem:[%s4038_s3 + $0x10] ss:$8 sps:$4 sm:$0xff]   ;;  %v2764_v4 = vld [vmem:[%s4038_s3 + $0x24] ss:$8 sps:$4 sm:$0xff]   ;;  %v2688_v6 = vld [vmem:[%s4036_s1 + $0x194] ss:$8 sps:$4 sm:$0xff]  }
  0x17   :  { %688 = vmatpush1.bf16.msra.mxu0 %v2628_v11  ;;  %1107 = vmatprep.subr.bf16.mxu1 %v2761_v0  ;;  %v2766_v7 = vld [vmem:[%s4038_s3 + $0x20] ss:$8 sps:$4 sm:$0xff]   ;;  %v2686_v8 = vld [vmem:[%s4036_s1 + $0x190] ss:$8 sps:$4 sm:$0xff]   ;;  %v2691_v9 = vld [vmem:[%s4036_s1 + $0x1a4] ss:$8 sps:$4 sm:$0xff]  }
  0x18   :  { %689 = vmatprep.subr.bf16.mxu0 %v2629_v12  ;;  %v2767_v10 = vld [vmem:[%s4038_s3 + $0x34] ss:$8 sps:$4 sm:$0xff]   ;;  %v2769_v11 = vld [vmem:[%s4038_s3 + $0x30] ss:$8 sps:$4 sm:$0xff]   ;;  %v2770_v12 = vld [vmem:[%s4038_s3 + $0x44] ss:$8 sps:$4 sm:$0xff]  }
  0x19   :  { %v2689_v13 = vld [vmem:[%s4036_s1 + $0x1a0] ss:$8 sps:$4 sm:$0xff]   ;;  %v2694_v14 = vld [vmem:[%s4036_s1 + $0x1b4] ss:$8 sps:$4 sm:$0xff]   ;;  %v2709_v36 = vld [vmem:[%s4036_s1 + $0x204] ss:$8 sps:$4 sm:$0xff]  }
  0x1a   :  { %1108 = vmatpush1.bf16.msra.mxu1 %v2763_v3  ;;  %v2772_v15 = vld [vmem:[%s4038_s3 + $0x40] ss:$8 sps:$4 sm:$0xff]   ;;  %v2787_v39 = vld [vmem:[%s4038_s3 + $0x90] ss:$8 sps:$4 sm:$0xff]   ;;  %v2791_v46 = vld [vmem:[%s4038_s3 + $0xb4] ss:$8 sps:$4 sm:$0xff]  }
  0x1b   :  { %690 = vmatpush1.bf16.msra.mxu0 %v2631_v16  ;;  %1109 = vmatprep.subr.bf16.mxu1 %v2764_v4  ;;  %v2773_v16 = vld [vmem:[%s4038_s3 + $0x54] ss:$8 sps:$4 sm:$0xff]   ;;  %v45_v37 = vld [vmem:[%s4035_s0 + $0x88] sm:$0xff]  ;;  %v52_v38 = vld [vmem:[%s4035_s0 + $0xc0] sm:$0xff] }
  0x1c   :  { %691 = vmatprep.subr.bf16.mxu0 %v2632_v17  ;;  %v2692_v17 = vld [vmem:[%s4036_s1 + $0x1b0] ss:$8 sps:$4 sm:$0xff]   ;;  %v44_v48 = vld [vmem:[%s4035_s0 + $0x80] sm:$0xff] }
  0x1d   :  { %v2710_v47 = vld [vmem:[%s4036_s1 + $0x210] ss:$8 sps:$4 sm:$0xff]  }
  0x1e   :  { %1110 = vmatpush1.bf16.msra.mxu1 %v2766_v7  ;;  %v51_v49 = vld [vmem:[%s4035_s0 + $0xb8] sm:$0xff] }
  0x1f   :  { %692 = vmatpush1.bf16.msra.mxu0 %v2634_v18  ;;  %1111 = vmatprep.subr.bf16.mxu1 %v2767_v10  ;;  %v2697_v18 = vld [vmem:[%s4036_s1 + $0x1c4] ss:$8 sps:$4 sm:$0xff]  }
  0x20   :  { %693 = vmatprep.subr.bf16.mxu0 %v2635_v19  ;;  %v2775_v19 = vld [vmem:[%s4038_s3 + $0x50] ss:$8 sps:$4 sm:$0xff]  }
  0x22   :  { %1112 = vmatpush1.bf16.msra.mxu1 %v2769_v11 }
  0x23   :  { %694 = vmatpush1.bf16.msra.mxu0 %v2637_v20  ;;  %1113 = vmatprep.subr.bf16.mxu1 %v2770_v12  ;;  %v2776_v20 = vld [vmem:[%s4038_s3 + $0x64] ss:$8 sps:$4 sm:$0xff]  }
  0x24   :  { %695 = vmatprep.subr.bf16.mxu0 %v2638_v21  ;;  %v2695_v21 = vld [vmem:[%s4036_s1 + $0x1c0] ss:$8 sps:$4 sm:$0xff]  }
  0x26   :  { %1114 = vmatpush1.bf16.msra.mxu1 %v2772_v15 }
  0x27   :  { %696 = vmatpush1.bf16.msra.mxu0 %v2640_v22  ;;  %v2700_v22 = vld [vmem:[%s4036_s1 + $0x1d4] ss:$8 sps:$4 sm:$0xff]   ;;  %1115 = vmatprep.subr.bf16.mxu1 %v2773_v16 }
  0x28   :  { %697 = vmatprep.subr.bf16.mxu0 %v2641_v23  ;;  %v2778_v23 = vld [vmem:[%s4038_s3 + $0x60] ss:$8 sps:$4 sm:$0xff]  }
  0x2a   :  { %1116 = vmatpush1.bf16.msra.mxu1 %v2775_v19 }
  0x2b   :  { %698 = vmatpush1.bf16.msra.mxu0 %v2643_v24  ;;  %v2779_v24 = vld [vmem:[%s4038_s3 + $0x74] ss:$8 sps:$4 sm:$0xff]   ;;  %1117 = vmatprep.subr.bf16.mxu1 %v2776_v20 }
  0x2c   :  { %699 = vmatprep.subr.bf16.mxu0 %v2644_v25  ;;  %v2698_v25 = vld [vmem:[%s4036_s1 + $0x1d0] ss:$8 sps:$4 sm:$0xff]  }
  0x2e   :  { %1118 = vmatpush1.bf16.msra.mxu1 %v2778_v23 }
  0x2f   :  { %700 = vmatpush1.bf16.msra.mxu0 %v2646_v26  ;;  %v2703_v26 = vld [vmem:[%s4036_s1 + $0x1e4] ss:$8 sps:$4 sm:$0xff]   ;;  %1119 = vmatprep.subr.bf16.mxu1 %v2779_v24 }
  0x30   :  { %701 = vmatprep.subr.bf16.mxu0 %v2647_v27  ;;  %v2781_v27 = vld [vmem:[%s4038_s3 + $0x70] ss:$8 sps:$4 sm:$0xff]  }
  0x32   :  { %1120 = vmatpush1.bf16.msra.mxu1 %v2781_v27 }
  0x33   :  { %702 = vmatpush1.bf16.msra.mxu0 %v2649_v28  ;;  %v2782_v28 = vld [vmem:[%s4038_s3 + $0x84] ss:$8 sps:$4 sm:$0xff]  }
  0x34   :  { %703 = vmatprep.subr.bf16.mxu0 %v2650_v29  ;;  %v2701_v29 = vld [vmem:[%s4036_s1 + $0x1e0] ss:$8 sps:$4 sm:$0xff]   ;;  %1121 = vmatprep.subr.bf16.mxu1 %v2782_v28 }
  0x37   :  { %704 = vmatpush1.bf16.msra.mxu0 %v2652_v30  ;;  %v2706_v30 = vld [vmem:[%s4036_s1 + $0x1f4] ss:$8 sps:$4 sm:$0xff]  }
  0x38   :  { %705 = vmatprep.subr.bf16.mxu0 %v2653_v31  ;;  %v2784_v31 = vld [vmem:[%s4038_s3 + $0x80] ss:$8 sps:$4 sm:$0xff]  }
  0x39   :  { %1122 = vmatpush1.bf16.msra.mxu1 %v2784_v31 }
  0x3b   :  { %706 = vmatpush1.bf16.msra.mxu0 %v2655_v32  ;;  %v2785_v32 = vld [vmem:[%s4038_s3 + $0x94] ss:$8 sps:$4 sm:$0xff]  }
  0x3c   :  { %707 = vmatprep.subr.bf16.mxu0 %v2656_v33  ;;  %v2704_v33 = vld [vmem:[%s4036_s1 + $0x1f0] ss:$8 sps:$4 sm:$0xff]   ;;  %1123 = vmatprep.subr.bf16.mxu1 %v2785_v32 }
  0x3d   :  { %1124 = vmatpush1.bf16.msra.mxu1 %v2787_v39 }
  0x3f   :  { %708 = vmatpush1.bf16.msra.mxu0 %v2658_v34  ;;  %v30_v34 = vld [vmem:[%s4035_s0 + $0x10] sm:$0xff] }
  0x40   :  { %730 = vmatprep.subr.bf16.mxu0 %v2661_v35  ;;  %v37_v35 = vld [vmem:[%s4035_s0 + $0x48] sm:$0xff] }
  0x42   :  { %710 = vmatmul.mubr.bf16.vlgmr.msra.gmra.mrb[0].mxu0 %v56_v40  ;;  %v2788_v40 = vld [vmem:[%s4038_s3 + $0xa4] ss:$8 sps:$4 sm:$0xff]  }
  0x43   :  { %731 = vmatpush1.bf16.msra.mxu0 %v2659_v41  ;;  %719 = vmatprep.mubr.bf16.mxu0 %v64_v42  ;;  %v2707_v41 = vld [vmem:[%s4036_s1 + $0x200] ss:$8 sps:$4 sm:$0xff]   ;;  %v58_v42 = vpack.c.bf16 %v37_v35, %v30_v34 }
  0x44   :  { %732 = vmatprep.subr.bf16.mxu0 %v2664_v43  ;;  %v2712_v43 = vld [vmem:[%s4036_s1 + $0x214] ss:$8 sps:$4 sm:$0xff]   ;;  %1125 = vmatprep.subr.bf16.mxu1 %v2788_v40 }
  0x47   :  { %733 = vmatpush1.bf16.msra.mxu0 %v2662_v44  ;;  %v66_v44 = vpack.c.bf16 %v52_v38, %v45_v37 }
  0x48   :  { %734 = vmatprep.subr.bf16.mxu0 %v2667_v45  ;;  %v2790_v45 = vld [vmem:[%s4038_s3 + $0xa0] ss:$8 sps:$4 sm:$0xff]  }
  0x49   :  { %1126 = vmatpush1.bf16.msra.mxu1 %v2790_v45 }
  0x4a   :  { %720 = vmatmul.mubr.bf16.gmra.mrb[4].mxu0 %v63_v50  ;;  %v2715_v50 = vld [vmem:[%s4036_s1 + $0x224] ss:$8 sps:$4 sm:$0xff]   ;;  %1127 = vmatprep.subr.bf16.mxu1 %v2791_v46 }
  0x4b   :  { %735 = vmatpush1.bf16.msra.mxu0 %v2665_v51  ;;  %762 = vmatprep.mubr.bf16.mxu0 %v59_v52  ;;  %v33_v51 = vld [vmem:[%s4035_s0 + $0x28] sm:$0xff]  ;;  %v40_v52 = vld [vmem:[%s4035_s0 + $0x60] sm:$0xff] }
  0x4c   :  { %736 = vmatprep.subr.bf16.mxu0 %v2670_v53  ;;  %v2793_v53 = vld [vmem:[%s4038_s3 + $0xb0] ss:$8 sps:$4 sm:$0xff]  }
  0x4d   :  { %1128 = vmatpush1.bf16.msra.mxu1 %v2793_v53 }
  0x4f   :  { %737 = vmatpush1.bf16.msra.mxu0 %v2668_v54  ;;  %v2794_v54 = vld [vmem:[%s4038_s3 + $0xc4] ss:$8 sps:$4 sm:$0xff]  }
  0x50   :  { %738 = vmatprep.subr.bf16.mxu0 %v2673_v55  ;;  %v2713_v55 = vld [vmem:[%s4036_s1 + $0x220] ss:$8 sps:$4 sm:$0xff]  }
  0x53   :  { %739 = vmatpush1.bf16.msra.mxu0 %v2671_v56  ;;  %v2718_v56 = vld [vmem:[%s4036_s1 + $0x234] ss:$8 sps:$4 sm:$0xff]  }
  0x54   :  { %740 = vmatprep.subr.bf16.mxu0 %v2676_v57  ;;  %v65_v57 = vpack.c.bf16 %v51_v49, %v44_v48 }
  0x57   :  { %741 = vmatpush1.bf16.msra.mxu0 %v2674_v58  ;;  %v61_v58 = vpack.c.bf16 %v40_v52, %v33_v51 }
  0x58   :  { %742 = vmatprep.subr.bf16.mxu0 %v2679_v59  ;;  %v2796_v59 = vld [vmem:[%s4038_s3 + $0xc0] ss:$8 sps:$4 sm:$0xff]  }
  0x5b   :  { %743 = vmatpush1.bf16.msra.mxu0 %v2677_v60 }
  0x5c   :  { %744 = vmatprep.subr.bf16.mxu0 %v2682_v61 }
  0x5f   :  { %745 = vmatpush1.bf16.msra.mxu0 %v2680_v1 }
  0x60   :  { %746 = vmatprep.subr.bf16.mxu0 %v2685_v2 }
  0x63   :  { %747 = vmatpush1.bf16.msra.mxu0 %v2683_v5 }
  0x64   :  { %748 = vmatprep.subr.bf16.mxu0 %v2688_v6 }
  0x67   :  { %749 = vmatpush1.bf16.msra.mxu0 %v2686_v8 }
  0x68   :  { %750 = vmatprep.subr.bf16.mxu0 %v2691_v9 }
  0x6b   :  { %751 = vmatpush1.bf16.msra.mxu0 %v2689_v13 }
  0x6c   :  { %752 = vmatprep.subr.bf16.mxu0 %v2694_v14 }
  0x6f   :  { %753 = vmatpush1.bf16.msra.mxu0 %v2692_v17 }
  0x70   :  { %754 = vmatprep.subr.bf16.mxu0 %v2697_v18 }
  0x73   :  { %755 = vmatpush1.bf16.msra.mxu0 %v2695_v21 }
  0x74   :  { %756 = vmatprep.subr.bf16.mxu0 %v2700_v22 }
  0x77   :  { %757 = vmatpush1.bf16.msra.mxu0 %v2698_v25 }
  0x78   :  { %758 = vmatprep.subr.bf16.mxu0 %v2703_v26 }
  0x7b   :  { %759 = vmatpush1.bf16.msra.mxu0 %v2701_v29 }
  0x7c   :  { %760 = vmatprep.subr.bf16.mxu0 %v2706_v30 }
  0x7f   :  { %761 = vmatpush1.bf16.msra.mxu0 %v2704_v33 }
  0x80   :  { %783 = vmatprep.subr.bf16.mxu0 %v2709_v36 }
  0x82   :  { %763 = vmatmul.mubr.bf16.vlgmr.msra.gmra.mrb[0].mxu0 %v58_v42 }
  0x83   :  { %784 = vmatpush1.bf16.msra.mxu0 %v2707_v41  ;;  %772 = vmatprep.mubr.bf16.mxu0 %v66_v44 }
  0x84   :  { %785 = vmatprep.subr.bf16.mxu0 %v2712_v43 }
  0x87   :  { %786 = vmatpush1.bf16.msra.mxu0 %v2710_v47 }
  0x88   :  { %787 = vmatprep.subr.bf16.mxu0 %v2715_v50 }
  0x89   :  { %12 = vsyncpa [#allocation3], 0  ;;  %1129 = vmatprep.subr.bf16.mxu1 %v2794_v54  ;;  %v2797_v60 = vld [vmem:[%s4038_s3 + $0xd4] ss:$8 sps:$4 sm:$0xff]   ;;  %v2716_v61 = vld [vmem:[%s4036_s1 + $0x230] ss:$8 sps:$4 sm:$0xff]  }
  0x8a   :  { %773 = vmatmul.mubr.bf16.gmra.mrb[4].mxu0 %v65_v57  ;;  %v2721_v62 = vld [vmem:[%s4036_s1 + $0x244] ss:$8 sps:$4 sm:$0xff]   ;;  %1130 = vmatpush1.bf16.msra.mxu1 %v2796_v59  ;;  %v2719_v63 = vld [vmem:[%s4036_s1 + $0x240] ss:$8 sps:$4 sm:$0xff]   ;;  %v2724_v0 = vld [vmem:[%s4036_s1 + $0x254] ss:$8 sps:$4 sm:$0xff]   ;;  %v170_v57 = vlaneseq }
  0x8b   :  { %788 = vmatpush1.bf16.msra.mxu0 %v2713_v55  ;;  %815 = vmatprep.mubr.bf16.mxu0 %v61_v58  ;;  %v2722_v1 = vld [vmem:[%s4036_s1 + $0x250] ss:$8 sps:$4 sm:$0xff]   ;;  %v2727_v2 = vld [vmem:[%s4036_s1 + $0x264] ss:$8 sps:$4 sm:$0xff]   ;;  %v2725_v3 = vld [vmem:[%s4036_s1 + $0x260] ss:$8 sps:$4 sm:$0xff]  }
  0x8c   :  { %789 = vmatprep.subr.bf16.mxu0 %v2718_v56  ;;  %1131 = vmatprep.subr.bf16.mxu1 %v2797_v60  ;;  %v2730_v4 = vld [vmem:[%s4036_s1 + $0x274] ss:$8 sps:$4 sm:$0xff]   ;;  %v2728_v5 = vld [vmem:[%s4036_s1 + $0x270] ss:$8 sps:$4 sm:$0xff]   ;;  %v2733_v6 = vld [vmem:[%s4036_s1 + $0x284] ss:$8 sps:$4 sm:$0xff]  }
  0x8d   :  { %v2731_v7 = vld [vmem:[%s4036_s1 + $0x280] ss:$8 sps:$4 sm:$0xff]   ;;  %v2736_v8 = vld [vmem:[%s4036_s1 + $0x294] ss:$8 sps:$4 sm:$0xff]   ;;  %v2734_v9 = vld [vmem:[%s4036_s1 + $0x290] ss:$8 sps:$4 sm:$0xff]  }
  0x8e   :  { %v2739_v10 = vld [vmem:[%s4036_s1 + $0x2a4] ss:$8 sps:$4 sm:$0xff]   ;;  %v2737_v11 = vld [vmem:[%s4036_s1 + $0x2a0] ss:$8 sps:$4 sm:$0xff]   ;;  %v2742_v12 = vld [vmem:[%s4036_s1 + $0x2b4] ss:$8 sps:$4 sm:$0xff]  }
  0x8f   :  { %790 = vmatpush1.bf16.msra.mxu0 %v2716_v61  ;;  %v2740_v13 = vld [vmem:[%s4036_s1 + $0x2b0] ss:$8 sps:$4 sm:$0xff]   ;;  %v2745_v14 = vld [vmem:[%s4036_s1 + $0x2c4] ss:$8 sps:$4 sm:$0xff]   ;;  %v2743_v15 = vld [vmem:[%s4036_s1 + $0x2c0] ss:$8 sps:$4 sm:$0xff]  }
  0x90   :  { %791 = vmatprep.subr.bf16.mxu0 %v2721_v62  ;;  %v2748_v16 = vld [vmem:[%s4036_s1 + $0x2d4] ss:$8 sps:$4 sm:$0xff]   ;;  %v2746_v17 = vld [vmem:[%s4036_s1 + $0x2d0] ss:$8 sps:$4 sm:$0xff]   ;;  %v2751_v18 = vld [vmem:[%s4036_s1 + $0x2e4] ss:$8 sps:$4 sm:$0xff]  }
  0x91   :  { %v2749_v19 = vld [vmem:[%s4036_s1 + $0x2e0] ss:$8 sps:$4 sm:$0xff]   ;;  %v2754_v20 = vld [vmem:[%s4036_s1 + $0x2f4] ss:$8 sps:$4 sm:$0xff]   ;;  %v2752_v21 = vld [vmem:[%s4036_s1 + $0x2f0] ss:$8 sps:$4 sm:$0xff]  }
  0x92   :  { %v32_v22 = vld [vmem:[%s4035_s0 + $0x20] sm:$0xff]  ;;  %v39_v23 = vld [vmem:[%s4035_s0 + $0x58] sm:$0xff]  ;;  %v54_v26 = vld [vmem:[%s4035_s0 + $0xd0] sm:$0xff]  ;;  %v3102_v33 = vmov 0   ;;  %vm670_vm0 = vcmask 130048   ;;  %v3658_v58 = vshrl.u32 %v170_v57, 7 }
  0x93   :  { %792 = vmatpush1.bf16.msra.mxu0 %v2719_v63  ;;  %v2757_v24 = vld [vmem:[%s4036_s1 + $0x304] ss:$8 sps:$4 sm:$0xff]   ;;  %v47_v25 = vld [vmem:[%s4035_s0 + $0x98] sm:$0xff]  ;;  %v60_v27 = vpack.c.bf16 %v39_v23, %v32_v22  ;;  %v2755_v28 = vld [vmem:[%s4036_s1 + $0x300] ss:$8 sps:$4 sm:$0xff]  }
  0x94   :  { %793 = vmatprep.subr.bf16.mxu0 %v2724_v0  ;;  %v68_v29 = vpack.c.bf16 %v54_v26, %v47_v25  ;;  %v46_v30 = vld [vmem:[%s4035_s0 + $0x90] sm:$0xff]  ;;  %v53_v31 = vld [vmem:[%s4035_s0 + $0xc8] sm:$0xff]  ;;  %v48_v37 = vld [vmem:[%s4035_s0 + $0xa0] sm:$0xff]  ;;  %v3661_v59 = vsub.s32 0, %v3658_v58  ;;  %v3667_v61 = vsub.s32 1, %v3658_v58 }
  0x95   :  { %v67_v32 = vpack.c.bf16 %v53_v31, %v46_v30  ;;  %v34_v34 = vld [vmem:[%s4035_s0 + $0x30] sm:$0xff]  ;;  %v41_v35 = vld [vmem:[%s4035_s0 + $0x68] sm:$0xff]  ;;  %v55_v38 = vld [vmem:[%s4035_s0 + $0xd8] sm:$0xff] }
  0x96   :  { %v62_v36 = vpack.c.bf16 %v41_v35, %v34_v34  ;;  %v69_v39 = vpack.c.bf16 %v55_v38, %v48_v37  ;;  %v2799_v40 = vld [vmem:[%s4038_s3 + $0xd0] ss:$8 sps:$4 sm:$0xff]   ;;  %v2800_v41 = vld [vmem:[%s4038_s3 + $0xe4] ss:$8 sps:$4 sm:$0xff]   ;;  %v2802_v42 = vld [vmem:[%s4038_s3 + $0xe0] ss:$8 sps:$4 sm:$0xff]  }
  0x97   :  { %794 = vmatpush1.bf16.msra.mxu0 %v2722_v1  ;;  %1132 = vmatpush1.bf16.msra.mxu1 %v2799_v40  ;;  %v2803_v43 = vld [vmem:[%s4038_s3 + $0xf4] ss:$8 sps:$4 sm:$0xff]   ;;  %v2805_v44 = vld [vmem:[%s4038_s3 + $0xf0] ss:$8 sps:$4 sm:$0xff]   ;;  %v2808_v45 = vld [vmem:[%s4040_s5 + $0x4] ss:$28 sps:$4 sm:$0xff]  }
  0x98   :  { %795 = vmatprep.subr.bf16.mxu0 %v2727_v2  ;;  %1133 = vmatprep.subr.bf16.mxu1 %v2800_v41  ;;  %v2833_v46 = vld [vmem:[%s4040_s5 + $0x1d8] ss:$28 sps:$4 sm:$0xff]   ;;  %v2838_v48 = vld [vmem:[%s4040_s5 + $0x210] ss:$28 sps:$4 sm:$0xff]   ;;  %v2843_v50 = vld [vmem:[%s4040_s5 + $0x248] ss:$28 sps:$4 sm:$0xff]  }
  0x99   :  { %v2834_v47 = vld [vmem:[%s4040_s5 + $0x18] ss:$28 sps:$4 sm:$0xff]   ;;  %v2839_v49 = vld [vmem:[%s4040_s5 + $0x50] ss:$28 sps:$4 sm:$0xff]   ;;  %v2844_v51 = vld [vmem:[%s4040_s5 + $0x88] ss:$28 sps:$4 sm:$0xff]  }
  0x9a   :  { %v2848_v52 = vld [vmem:[%s4040_s5 + $0x280] ss:$28 sps:$4 sm:$0xff]   ;;  %v2853_v54 = vld [vmem:[%s4040_s5 + $0x2b8] ss:$28 sps:$4 sm:$0xff]   ;;  %v2858_v56 = vld [vmem:[%s4040_s5 + $0x2f0] ss:$28 sps:$4 sm:$0xff]  }
  0x9b   :  { %796 = vmatpush1.bf16.msra.mxu0 %v2725_v3  ;;  %1134 = vmatpush1.bf16.msra.mxu1 %v2802_v42  ;;  %v2849_v53 = vld [vmem:[%s4040_s5 + $0xc0] ss:$28 sps:$4 sm:$0xff]   ;;  %v2854_v55 = vld [vmem:[%s4040_s5 + $0xf8] ss:$28 sps:$4 sm:$0xff]   ;;  %v2815_v34 = vld [vmem:[%s4040_s5 + $0xa8] ss:$28 sps:$4 sm:$0xff]  }
  0x9c   :  { %797 = vmatprep.subr.bf16.mxu0 %v2730_v4  ;;  %1135 = vmatprep.subr.bf16.mxu1 %v2803_v43  ;;  %v168_v60 = vld [vmem:[%s4037_s2] sm:$0x3]  ;;  %v2823_v37 = vld [vmem:[%s4040_s5 + $0x11c] ss:$28 sps:$4 sm:$0xff]   ;;  %v2824_v40 = vld [vmem:[%s4040_s5 + $0x150] ss:$28 sps:$4 sm:$0xff]  }
  0x9d   :  { %v173_v62 = vrot.slane %v168_v60, %v3661_v59  ;;  %v177_v63 = vrot.slane %v168_v60, %v3667_v61  ;;  %v2820_v35 = vld [vmem:[%s4040_s5 + $0xe4] ss:$28 sps:$4 sm:$0xff]   ;;  %v2821_v38 = vld [vmem:[%s4040_s5 + $0x118] ss:$28 sps:$4 sm:$0xff]   ;;  %v2829_v41 = vld [vmem:[%s4040_s5 + $0x18c] ss:$28 sps:$4 sm:$0xff]  }
  0x9e   :  { %v2827_v42 = vld [vmem:[%s4040_s5 + $0x188] ss:$28 sps:$4 sm:$0xff]   ;;  %v2860_v57 = vld [vmem:[%s4040_s5 + $0x310] ss:$28 sps:$4 sm:$0xff]  }
  0x9f   :  { %798 = vmatpush1.bf16.msra.mxu0 %v2728_v5  ;;  %1136 = vmatpush1.bf16.msra.mxu1 %v2805_v44  ;;  %v2832_v43 = vld [vmem:[%s4040_s5 + $0x1c4] ss:$28 sps:$4 sm:$0xff]  }
  0xa0   :  { %799 = vmatprep.subr.bf16.mxu0 %v2733_v6  ;;  %1911 = vmatprep.subr.bf16.mxu1 %v2808_v45  ;;  %v2830_v44 = vld [vmem:[%s4040_s5 + $0x1c0] ss:$28 sps:$4 sm:$0xff]   ;;  %v2863_v60 = vld [vmem:[%s4040_s5 + $0x328] ss:$28 sps:$4 sm:$0xff]  }
  0xa1   :  { %v2837_v45 = vld [vmem:[%s4040_s5 + $0x1fc] ss:$28 sps:$4 sm:$0xff]  }
  0xa3   :  { %800 = vmatpush1.bf16.msra.mxu0 %v2731_v7 }
  0xa4   :  { %801 = vmatprep.subr.bf16.mxu0 %v2736_v8 }
  0xa7   :  { %802 = vmatpush1.bf16.msra.mxu0 %v2734_v9 }
  0xa8   :  { %803 = vmatprep.subr.bf16.mxu0 %v2739_v10 }
  0xab   :  { %804 = vmatpush1.bf16.msra.mxu0 %v2737_v11 }
  0xac   :  { %805 = vmatprep.subr.bf16.mxu0 %v2742_v12 }
  0xaf   :  { %806 = vmatpush1.bf16.msra.mxu0 %v2740_v13 }
  0xb0   :  { %807 = vmatprep.subr.bf16.mxu0 %v2745_v14 }
  0xb3   :  { %808 = vmatpush1.bf16.msra.mxu0 %v2743_v15  ;;  %v2806_v15 = vld [vmem:[%s4040_s5] ss:$28 sps:$4 sm:$0xff]  }
  0xb4   :  { %809 = vmatprep.subr.bf16.mxu0 %v2748_v16 }
  0xb7   :  { %810 = vmatpush1.bf16.msra.mxu0 %v2746_v17 }
  0xb8   :  { %811 = vmatprep.subr.bf16.mxu0 %v2751_v18  ;;  %v2811_v18 = vld [vmem:[%s4040_s5 + $0x3c] ss:$28 sps:$4 sm:$0xff]  }
  0xbb   :  { %812 = vmatpush1.bf16.msra.mxu0 %v2749_v19 }
  0xbc   :  { %813 = vmatprep.subr.bf16.mxu0 %v2754_v20 }
  0xbf   :  { %814 = vmatpush1.bf16.msra.mxu0 %v2752_v21 }
  0xc0   :  { %836 = vmatprep.subr.bf16.mxu0 %v2757_v24  ;;  %v2809_v24 = vld [vmem:[%s4040_s5 + $0x38] ss:$28 sps:$4 sm:$0xff]  }
  0xc2   :  { %816 = vmatmul.mubr.bf16.vlgmr.msra.gmra.mrb[0].mxu0 %v60_v27  ;;  %v2814_v27 = vld [vmem:[%s4040_s5 + $0x74] ss:$28 sps:$4 sm:$0xff]  }
  0xc3   :  { %837 = vmatpush1.bf16.msra.mxu0 %v2755_v28  ;;  %825 = vmatprep.mubr.bf16.mxu0 %v68_v29 }
  0xc4   :  { %2547 = vmatprep.subr.bf16.mxu0 %v2833_v46  ;;  %v2835_v46 = vld [vmem:[%s4040_s5 + $0x1f8] ss:$28 sps:$4 sm:$0xff]  }
  0xca   :  { %826 = vmatmul.mubr.bf16.gmra.mrb[4].mxu0 %v67_v32  ;;  %v2812_v32 = vld [vmem:[%s4040_s5 + $0x70] ss:$28 sps:$4 sm:$0xff]  }
  0xcb   :  { %868 = vmatprep.mubr.bf16.mxu0 %v3102_v33 }
  0xd2   :  { %2401 = vmatmul.mubr.msk.bf16.vlgmr.msra.gmra.mrb[0].mxu0 %vm670_vm0, %v62_v36  ;;  %v2818_v36 = vld [vmem:[%s4040_s5 + $0xe0] ss:$28 sps:$4 sm:$0xff]  }
  0xd3   :  { %878 = vmatprep.mubr.bf16.mxu0 %v3102_v33  ;;  %2548 = vmatpush3.bf16.msra.mxu0 %v2834_v47  ;;  %v2817_v33 = vld [vmem:[%s4040_s5 + $0xac] ss:$28 sps:$4 sm:$0xff]   ;;  %v2842_v47 = vld [vmem:[%s4040_s5 + $0x234] ss:$28 sps:$4 sm:$0xff]  }
  0xd4   :  { %2549 = vmatprep.subr.bf16.mxu0 %v2838_v48  ;;  %v2840_v48 = vld [vmem:[%s4040_s5 + $0x230] ss:$28 sps:$4 sm:$0xff]  }
  0xd7   :  { %2550 = vmatpush3.bf16.msra.mxu0 %v2839_v49  ;;  %v2847_v49 = vld [vmem:[%s4040_s5 + $0x26c] ss:$28 sps:$4 sm:$0xff]  }
  0xd8   :  { %2551 = vmatprep.subr.bf16.mxu0 %v2843_v50  ;;  %v2845_v50 = vld [vmem:[%s4040_s5 + $0x268] ss:$28 sps:$4 sm:$0xff]  }
  0xda   :  { %2402 = vmatmul.mubr.msk.bf16.gmra.mrb[4].mxu0 %vm670_vm0, %v69_v39  ;;  %v2826_v39 = vld [vmem:[%s4040_s5 + $0x154] ss:$28 sps:$4 sm:$0xff]  }
  0xdb   :  { %2552 = vmatpush3.bf16.msra.mxu0 %v2844_v51  ;;  %v2852_v51 = vld [vmem:[%s4040_s5 + $0x2a4] ss:$28 sps:$4 sm:$0xff]  }
  0xdc   :  { %2553 = vmatprep.subr.bf16.mxu0 %v2848_v52  ;;  %v2850_v52 = vld [vmem:[%s4040_s5 + $0x2a0] ss:$28 sps:$4 sm:$0xff]  }
  0xdf   :  { %2554 = vmatpush3.bf16.msra.mxu0 %v2849_v53  ;;  %v2857_v53 = vld [vmem:[%s4040_s5 + $0x2dc] ss:$28 sps:$4 sm:$0xff]  }
  0xe0   :  { %2555 = vmatprep.subr.bf16.mxu0 %v2853_v54  ;;  %v2855_v54 = vld [vmem:[%s4040_s5 + $0x2d8] ss:$28 sps:$4 sm:$0xff]  }
  0xe3   :  { %2556 = vmatpush3.bf16.msra.mxu0 %v2854_v55  ;;  %v2859_v55 = vld [vmem:[%s4040_s5 + $0x130] ss:$28 sps:$4 sm:$0xff]  }
  0xe4   :  { %2557 = vmatprep.subr.bf16.mxu0 %v2858_v56  ;;  %v2862_v56 = vld [vmem:[%s4040_s5 + $0x314] ss:$28 sps:$4 sm:$0xff]  }
  0xe7   :  { %2558 = vmatpush3.bf16.msra.mxu0 %v2859_v55  ;;  %v2900_v55 = vld [vmem:[%s4040_s5 + $0x238] ss:$28 sps:$4 sm:$0xff]  }
  0xe8   :  { %2559 = vmatprep.subr.bf16.mxu0 %v2863_v60  ;;  %v2908_v60 = vld [vmem:[%s4040_s5 + $0x2ac] ss:$28 sps:$4 sm:$0xff]  }
 0x1a5   :  { %v870_v0 = vpop.f32.mrb[0].mxu0 }
 0x1a6   :  { %v2575_v1 = vadd.f32 %v870_v0, %v173_v62  ;;  %v872_v2 = vpop.f32.mrb[1].mxu0  ;;  %v2865_v0 = vld [vmem:[%s4040_s5 + $0x348] ss:$28 sps:$4 sm:$0xff]  }
 0x1a7   :  { %v2576_v3 = vadd.f32 %v872_v2, %v177_v63  ;;  %v874_v4 = vpop.f32.mrb[2].mxu0  ;;  %v2869_v2 = vld [vmem:[%s4040_s5 + $0x1a0] ss:$28 sps:$4 sm:$0xff]  }
 0x1a8   :  { %v2577_v5 = vadd.f32 %v874_v4, %v173_v62  ;;  %v876_v6 = vpop.f32.mrb[3].mxu0  ;;  %v889_v8 = vmax.f32 %v2575_v1, 0.0  ;;  %v2868_v1 = vld [vmem:[%s4040_s5 + $0x360] ss:$28 sps:$4 sm:$0xff]  }
 0x1a9   :  { %v2578_v7 = vadd.f32 %v876_v6, %v177_v63  ;;  %v890_v10 = vmax.f32 %v2576_v3, 0.0  ;;  %v2872_v3 = vld [vmem:[%s4040_s5 + $0xc] ss:$28 sps:$4 sm:$0xff]   ;;  %v933_v4 = vld [vmem:[%s4039_s4] sm:$0x3] }
 0x1aa   :  { %v891_v9 = vmax.f32 %v2577_v5, 0.0  ;;  %v938_v5 = vrot.slane %v933_v4, %v3661_v59  ;;  %v942_v6 = vrot.slane %v933_v4, %v3667_v61  ;;  %v2915_v4 = vld [vmem:[%s4040_s5 + $0x350] ss:$28 sps:$4 sm:$0xff]  }
 0x1ab   :  { %v892_v11 = vmax.f32 %v2578_v7, 0.0 }
 0x1ac   :  { %v897_v12 = vpack.c.bf16 %v891_v9, %v889_v8 }
 0x1ad   :  { %v880_v13 = vpop.f32.mrb[4].mxu0  ;;  %v898_v14 = vpack.c.bf16 %v892_v11, %v890_v10 }
 0x1ae   :  { %v2579_v16 = vadd.f32 %v880_v13, %v173_v62  ;;  %v882_v17 = vpop.f32.mrb[5].mxu0 }
 0x1af   :  { %v2580_v19 = vadd.f32 %v882_v17, %v177_v63  ;;  %v884_v20 = vpop.f32.mrb[6].mxu0  ;;  %1137 = vmatprep.mubr.bf16.mxu1 %v898_v14 }
 0x1b0   :  { %v2581_v21 = vadd.f32 %v884_v20, %v173_v62  ;;  %v886_v22 = vpop.f32.mrb[7].mxu0  ;;  %1138 = vmatmul.mubr.bf16.vlgmr.msra.gmra.mrb[0].mxu1 %v897_v12  ;;  %v893_v25 = vmax.f32 %v2579_v16, 0.0  ;;  %v2864_v62 = vld [vmem:[%s4040_s5 + $0x168] ss:$28 sps:$4 sm:$0xff]  }
 0x1b1   :  { %v2582_v23 = vadd.f32 %v886_v22, %v177_v63  ;;  %1912 = vmatpush1.bf16.msra.mxu1 %v2806_v15  ;;  %v894_v28 = vmax.f32 %v2580_v19, 0.0  ;;  %2560 = vmatpush3.bf16.msra.mxu0 %v2864_v62  ;;  %v2867_v63 = vld [vmem:[%s4040_s5 + $0x34c] ss:$28 sps:$4 sm:$0xff]  }
 0x1b2   :  { %v895_v26 = vmax.f32 %v2581_v21, 0.0  ;;  %1913 = vmatprep.subr.bf16.mxu1 %v2811_v18  ;;  %2561 = vmatprep.subr.bf16.mxu0 %v2868_v1  ;;  %v2870_v22 = vld [vmem:[%s4040_s5 + $0x8] ss:$28 sps:$4 sm:$0xff]   ;;  %v2914_v1 = vld [vmem:[%s4040_s5 + $0x31c] ss:$28 sps:$4 sm:$0xff]  }
 0x1b3   :  { %v896_v29 = vmax.f32 %v2582_v23, 0.0  ;;  %v2906_v62 = vld [vmem:[%s4040_s5 + $0x2a8] ss:$28 sps:$4 sm:$0xff]  }
 0x1b4   :  { %v899_v30 = vpack.c.bf16 %v895_v26, %v893_v25  ;;  %v2875_v25 = vld [vmem:[%s4040_s5 + $0x44] ss:$28 sps:$4 sm:$0xff]  }
 0x1b5   :  { %v900_v31 = vpack.c.bf16 %v896_v29, %v894_v28  ;;  %1914 = vmatpush1.bf16.msra.mxu1 %v2809_v24  ;;  %2562 = vmatpush3.bf16.msra.mxu0 %v2869_v2  ;;  %v2912_v2 = vld [vmem:[%s4040_s5 + $0x318] ss:$28 sps:$4 sm:$0xff]  }
 0x1b6   :  { %1915 = vmatprep.subr.bf16.mxu1 %v2814_v27 }
 0x1b7   :  { %1147 = vmatprep.mubr.bf16.mxu1 %v900_v31  ;;  %v2873_v31 = vld [vmem:[%s4040_s5 + $0x40] ss:$28 sps:$4 sm:$0xff]  }
 0x1b8   :  { %1148 = vmatmul.mubr.bf16.gmra.mrb[4].mxu1 %v899_v30 }
 0x1b9   :  { %1916 = vmatpush1.bf16.msra.mxu1 %v2812_v32 }
 0x1ba   :  { %1917 = vmatprep.subr.bf16.mxu1 %v2817_v33 }
 0x1bd   :  { %1918 = vmatpush1.bf16.msra.mxu1 %v2815_v34  ;;  %v2878_v34 = vld [vmem:[%s4040_s5 + $0x7c] ss:$28 sps:$4 sm:$0xff]  }
 0x1be   :  { %1919 = vmatprep.subr.bf16.mxu1 %v2820_v35 }
 0x1c1   :  { %1920 = vmatpush1.bf16.msra.mxu1 %v2818_v36 }
 0x1c2   :  { %1921 = vmatprep.subr.bf16.mxu1 %v2823_v37 }
 0x1c5   :  { %1922 = vmatpush1.bf16.msra.mxu1 %v2821_v38 }
 0x1c6   :  { %1923 = vmatprep.subr.bf16.mxu1 %v2826_v39  ;;  %v2876_v39 = vld [vmem:[%s4040_s5 + $0x78] ss:$28 sps:$4 sm:$0xff]  }
 0x1c9   :  { %1924 = vmatpush1.bf16.msra.mxu1 %v2824_v40  ;;  %v2881_v40 = vld [vmem:[%s4040_s5 + $0xb4] ss:$28 sps:$4 sm:$0xff]  }
 0x1ca   :  { %1925 = vmatprep.subr.bf16.mxu1 %v2829_v41  ;;  %v2879_v41 = vld [vmem:[%s4040_s5 + $0xb0] ss:$28 sps:$4 sm:$0xff]  }
 0x1cd   :  { %1926 = vmatpush1.bf16.msra.mxu1 %v2827_v42  ;;  %v2884_v42 = vld [vmem:[%s4040_s5 + $0xec] ss:$28 sps:$4 sm:$0xff]  }
 0x1ce   :  { %1927 = vmatprep.subr.bf16.mxu1 %v2832_v43  ;;  %v2882_v43 = vld [vmem:[%s4040_s5 + $0xe8] ss:$28 sps:$4 sm:$0xff]  }
 0x1d1   :  { %1928 = vmatpush1.bf16.msra.mxu1 %v2830_v44  ;;  %v2887_v44 = vld [vmem:[%s4040_s5 + $0x124] ss:$28 sps:$4 sm:$0xff]  }
 0x1d2   :  { %1929 = vmatprep.subr.bf16.mxu1 %v2837_v45  ;;  %v2885_v45 = vld [vmem:[%s4040_s5 + $0x120] ss:$28 sps:$4 sm:$0xff]  }
 0x1d5   :  { %1930 = vmatpush1.bf16.msra.mxu1 %v2835_v46  ;;  %v2890_v46 = vld [vmem:[%s4040_s5 + $0x15c] ss:$28 sps:$4 sm:$0xff]  }
 0x1d6   :  { %1931 = vmatprep.subr.bf16.mxu1 %v2842_v47  ;;  %v2888_v47 = vld [vmem:[%s4040_s5 + $0x158] ss:$28 sps:$4 sm:$0xff]  }
 0x1d9   :  { %1932 = vmatpush1.bf16.msra.mxu1 %v2840_v48  ;;  %v2893_v48 = vld [vmem:[%s4040_s5 + $0x194] ss:$28 sps:$4 sm:$0xff]  }
 0x1da   :  { %1933 = vmatprep.subr.bf16.mxu1 %v2847_v49  ;;  %v2891_v49 = vld [vmem:[%s4040_s5 + $0x190] ss:$28 sps:$4 sm:$0xff]  }
 0x1dd   :  { %1934 = vmatpush1.bf16.msra.mxu1 %v2845_v50  ;;  %v2896_v50 = vld [vmem:[%s4040_s5 + $0x1cc] ss:$28 sps:$4 sm:$0xff]  }
 0x1de   :  { %1935 = vmatprep.subr.bf16.mxu1 %v2852_v51  ;;  %v2894_v51 = vld [vmem:[%s4040_s5 + $0x1c8] ss:$28 sps:$4 sm:$0xff]  }
 0x1e1   :  { %1936 = vmatpush1.bf16.msra.mxu1 %v2850_v52  ;;  %v2899_v52 = vld [vmem:[%s4040_s5 + $0x204] ss:$28 sps:$4 sm:$0xff]  }
 0x1e2   :  { %1937 = vmatprep.subr.bf16.mxu1 %v2857_v53  ;;  %v2897_v53 = vld [vmem:[%s4040_s5 + $0x200] ss:$28 sps:$4 sm:$0xff]  }
 0x1e5   :  { %1938 = vmatpush1.bf16.msra.mxu1 %v2855_v54  ;;  %v2902_v54 = vld [vmem:[%s4040_s5 + $0x23c] ss:$28 sps:$4 sm:$0xff]  }
 0x1e6   :  { %1939 = vmatprep.subr.bf16.mxu1 %v2862_v56  ;;  %v2905_v56 = vld [vmem:[%s4040_s5 + $0x274] ss:$28 sps:$4 sm:$0xff]  }
 0x1e9   :  { %1940 = vmatpush1.bf16.msra.mxu1 %v2860_v57  ;;  %v2903_v57 = vld [vmem:[%s4040_s5 + $0x270] ss:$28 sps:$4 sm:$0xff]  }
 0x1ea   :  { %1941 = vmatprep.subr.bf16.mxu1 %v2867_v63  ;;  %v2911_v63 = vld [vmem:[%s4040_s5 + $0x2e4] ss:$28 sps:$4 sm:$0xff]  }
 0x1ed   :  { %1942 = vmatpush1.bf16.msra.mxu1 %v2865_v0  ;;  %v2909_v0 = vld [vmem:[%s4040_s5 + $0x2e0] ss:$28 sps:$4 sm:$0xff]  }
 0x1ee   :  { %1964 = vmatprep.subr.bf16.mxu1 %v2872_v3  ;;  %v2917_v3 = vld [vmem:[%s4040_s5 + $0x354] ss:$28 sps:$4 sm:$0xff]  }
 0x283   :  { %v1139_v7 = vpop.f32.mrb[0].mxu1 }
 0x284   :  { %v1140_v8 = vadd.f32 %v1139_v7, %v938_v5  ;;  %v1141_v9 = vpop.f32.mrb[1].mxu1  ;;  %v2923_v7 = vld [vmem:[%s4040_s5 + $0x4c] ss:$28 sps:$4 sm:$0xff]  }
 0x285   :  { %v1142_v10 = vadd.f32 %v1141_v9, %v942_v6  ;;  %v1143_v11 = vpop.f32.mrb[2].mxu1  ;;  %v2926_v9 = vld [vmem:[%s4040_s5 + $0x84] ss:$28 sps:$4 sm:$0xff]  }
 0x286   :  { %v1144_v12 = vadd.f32 %v1143_v11, %v938_v5  ;;  %v1145_v13 = vpop.f32.mrb[3].mxu1  ;;  %v1158_v15 = vmax.f32 %v1140_v8, 0.0  ;;  %v2921_v8 = vld [vmem:[%s4040_s5 + $0x48] ss:$28 sps:$4 sm:$0xff]   ;;  %v2929_v11 = vld [vmem:[%s4040_s5 + $0xbc] ss:$28 sps:$4 sm:$0xff]  }
 0x287   :  { %v1146_v14 = vadd.f32 %v1145_v13, %v942_v6  ;;  %v1159_v17 = vmax.f32 %v1142_v10, 0.0  ;;  %v2924_v10 = vld [vmem:[%s4040_s5 + $0x80] ss:$28 sps:$4 sm:$0xff]   ;;  %v2932_v13 = vld [vmem:[%s4040_s5 + $0xf4] ss:$28 sps:$4 sm:$0xff]  }
 0x288   :  { %v1160_v16 = vmax.f32 %v1144_v12, 0.0  ;;  %v2927_v12 = vld [vmem:[%s4040_s5 + $0xb8] ss:$28 sps:$4 sm:$0xff]  }
 0x289   :  { %v1161_v18 = vmax.f32 %v1146_v14, 0.0  ;;  %v2930_v14 = vld [vmem:[%s4040_s5 + $0xf0] ss:$28 sps:$4 sm:$0xff]  }
 0x28a   :  { %v3787_v19 = vpack.c.bf16 %v1160_v16, %v1158_v15  ;;  %v2935_v15 = vld [vmem:[%s4040_s5 + $0x12c] ss:$28 sps:$4 sm:$0xff]  }
 0x28b   :  { %v3789_v20 = vpack.c.bf16 %v1161_v18, %v1159_v17  ;;  %v1149_v21 = vpop.f32.mrb[4].mxu1  ;;  %v2933_v16 = vld [vmem:[%s4040_s5 + $0x128] ss:$28 sps:$4 sm:$0xff]   ;;  %v2936_v18 = vld [vmem:[%s4040_s5 + $0x160] ss:$28 sps:$4 sm:$0xff]  }
 0x28c   :  { %v1150_v23 = vadd.f32 %v1149_v21, %v938_v5  ;;  %v1151_v24 = vpop.f32.mrb[5].mxu1  ;;  %v2938_v17 = vld [vmem:[%s4040_s5 + $0x164] ss:$28 sps:$4 sm:$0xff]   ;;  %v2939_v21 = vld [vmem:[%s4040_s5 + $0x198] ss:$28 sps:$4 sm:$0xff]  }
 0x28d   :  { %v1152_v26 = vadd.f32 %v1151_v24, %v942_v6  ;;  %v1153_v27 = vpop.f32.mrb[6].mxu1  ;;  %1943 = vmatprep.mubr.bf16.mxu1 %v3789_v20  ;;  %2102 = vmatprep.mubr.bf16.mxu0 %v3789_v20  ;;  %v2947_v24 = vld [vmem:[%s4040_s5 + $0x20c] ss:$28 sps:$4 sm:$0xff]  }
 0x28e   :  { %v1154_v28 = vadd.f32 %v1153_v27, %v938_v5  ;;  %v1155_v29 = vpop.f32.mrb[7].mxu1  ;;  %1944 = vmatmul.mubr.bf16.vlgmr.msra.gmra.mrb[8].mxu1 %v3787_v19  ;;  %2103 = vmatmul.mubr.bf16.vlgmr.msra.gmra.mrb[8].mxu0 %v3787_v19  ;;  %v1162_v32 = vmax.f32 %v1150_v23, 0.0  ;;  %v2920_v5 = vld [vmem:[%s4040_s5 + $0x14] ss:$28 sps:$4 sm:$0xff]   ;;  %v2948_v27 = vld [vmem:[%s4040_s5 + $0x240] ss:$28 sps:$4 sm:$0xff]  }
 0x28f   :  { %v1156_v30 = vadd.f32 %v1155_v29, %v942_v6  ;;  %1965 = vmatpush1.bf16.msra.mxu1 %v2870_v22  ;;  %v1163_v35 = vmax.f32 %v1152_v26, 0.0  ;;  %v2918_v6 = vld [vmem:[%s4040_s5 + $0x10] ss:$28 sps:$4 sm:$0xff]   ;;  %v2950_v26 = vld [vmem:[%s4040_s5 + $0x244] ss:$28 sps:$4 sm:$0xff]  }
 0x290   :  { %v1164_v33 = vmax.f32 %v1154_v28, 0.0  ;;  %1966 = vmatprep.subr.bf16.mxu1 %v2875_v25  ;;  %v2944_v22 = vld [vmem:[%s4040_s5 + $0x1d4] ss:$28 sps:$4 sm:$0xff]   ;;  %v2945_v25 = vld [vmem:[%s4040_s5 + $0x208] ss:$28 sps:$4 sm:$0xff]  }
 0x291   :  { %v1165_v36 = vmax.f32 %v1156_v30, 0.0  ;;  %v2942_v23 = vld [vmem:[%s4040_s5 + $0x1d0] ss:$28 sps:$4 sm:$0xff]   ;;  %v2953_v28 = vld [vmem:[%s4040_s5 + $0x27c] ss:$28 sps:$4 sm:$0xff]  }
 0x292   :  { %v3807_v37 = vpack.c.bf16 %v1164_v33, %v1162_v32  ;;  %v2951_v29 = vld [vmem:[%s4040_s5 + $0x278] ss:$28 sps:$4 sm:$0xff]   ;;  %v2959_v32 = vld [vmem:[%s4040_s5 + $0x2ec] ss:$28 sps:$4 sm:$0xff]  }
 0x293   :  { %v3809_v38 = vpack.c.bf16 %v1165_v36, %v1163_v35  ;;  %1967 = vmatpush1.bf16.msra.mxu1 %v2873_v31  ;;  %v2956_v30 = vld [vmem:[%s4040_s5 + $0x2b4] ss:$28 sps:$4 sm:$0xff]   ;;  %v2957_v33 = vld [vmem:[%s4040_s5 + $0x2e8] ss:$28 sps:$4 sm:$0xff]   ;;  %v2960_v35 = vld [vmem:[%s4040_s5 + $0x320] ss:$28 sps:$4 sm:$0xff]  }
 0x294   :  { %1968 = vmatprep.subr.bf16.mxu1 %v2878_v34  ;;  %v2954_v31 = vld [vmem:[%s4040_s5 + $0x2b0] ss:$28 sps:$4 sm:$0xff]   ;;  %v2962_v34 = vld [vmem:[%s4040_s5 + $0x324] ss:$28 sps:$4 sm:$0xff]   ;;  %v2965_v36 = vld [vmem:[%s4040_s5 + $0x35c] ss:$28 sps:$4 sm:$0xff]  }
 0x295   :  { %1953 = vmatprep.mubr.bf16.mxu1 %v3809_v38  ;;  %2110 = vmatprep.mubr.bf16.mxu0 %v3809_v38 }
 0x296   :  { %1954 = vmatmul.mubr.bf16.gmra.mrb[12].mxu1 %v3807_v37  ;;  %2111 = vmatmul.mubr.bf16.gmra.mrb[12].mxu0 %v3807_v37 }
 0x297   :  { %1969 = vmatpush1.bf16.msra.mxu1 %v2876_v39  ;;  %1996 = vmatprep.mubr.bf16.mxu1 %v3789_v20  ;;  %v2963_v39 = vld [vmem:[%s4040_s5 + $0x358] ss:$28 sps:$4 sm:$0xff]  }
 0x298   :  { %1970 = vmatprep.subr.bf16.mxu1 %v2881_v40  ;;  %v4003_v40 = vld [vmem:[%s4041_s6] sm:$0x7f] }
 0x29b   :  { %1971 = vmatpush1.bf16.msra.mxu1 %v2879_v41  ;;  %v1326_v41 = vsub.s32 6, %v3658_v58 }
 0x29c   :  { %1972 = vmatprep.subr.bf16.mxu1 %v2884_v42  ;;  %v1303_v42 = vrot.slane %v4003_v40, %v3661_v59 }
 0x29f   :  { %1973 = vmatpush1.bf16.msra.mxu1 %v2882_v43  ;;  %v1307_v43 = vrot.slane %v4003_v40, %v3667_v61 }
 0x2a0   :  { %1974 = vmatprep.subr.bf16.mxu1 %v2887_v44 }
 0x2a3   :  { %1975 = vmatpush1.bf16.msra.mxu1 %v2885_v45 }
 0x2a4   :  { %1976 = vmatprep.subr.bf16.mxu1 %v2890_v46 }
 0x2a7   :  { %1977 = vmatpush1.bf16.msra.mxu1 %v2888_v47 }
 0x2a8   :  { %1978 = vmatprep.subr.bf16.mxu1 %v2893_v48 }
 0x2ab   :  { %1979 = vmatpush1.bf16.msra.mxu1 %v2891_v49 }
 0x2ac   :  { %1980 = vmatprep.subr.bf16.mxu1 %v2896_v50 }
 0x2af   :  { %1981 = vmatpush1.bf16.msra.mxu1 %v2894_v51 }
 0x2b0   :  { %1982 = vmatprep.subr.bf16.mxu1 %v2899_v52 }
 0x2b3   :  { %1983 = vmatpush1.bf16.msra.mxu1 %v2897_v53 }
 0x2b4   :  { %1984 = vmatprep.subr.bf16.mxu1 %v2902_v54 }
 0x2b7   :  { %1985 = vmatpush1.bf16.msra.mxu1 %v2900_v55 }
 0x2b8   :  { %1986 = vmatprep.subr.bf16.mxu1 %v2905_v56 }
 0x2bb   :  { %1987 = vmatpush1.bf16.msra.mxu1 %v2903_v57 }
 0x2bc   :  { %1988 = vmatprep.subr.bf16.mxu1 %v2908_v60 }
 0x2bf   :  { %1989 = vmatpush1.bf16.msra.mxu1 %v2906_v62 }
 0x2c0   :  { %1990 = vmatprep.subr.bf16.mxu1 %v2911_v63 }
 0x2c3   :  { %1991 = vmatpush1.bf16.msra.mxu1 %v2909_v0 }
 0x2c4   :  { %1992 = vmatprep.subr.bf16.mxu1 %v2914_v1 }
 0x2c7   :  { %1993 = vmatpush1.bf16.msra.mxu1 %v2912_v2 }
 0x2c8   :  { %1994 = vmatprep.subr.bf16.mxu1 %v2917_v3 }
 0x2cb   :  { %1995 = vmatpush1.bf16.msra.mxu1 %v2915_v4 }
 0x2cc   :  { %2017 = vmatprep.subr.bf16.mxu1 %v2920_v5 }
 0x2ce   :  { %1997 = vmatmul.mubr.bf16.vlgmr.msra.gmra.mrb[16].mxu1 %v3787_v19 }
 0x2cf   :  { %2006 = vmatprep.mubr.bf16.mxu1 %v3809_v38  ;;  %2018 = vmatpush1.bf16.msra.mxu1 %v2918_v6 }
 0x2d0   :  { %2019 = vmatprep.subr.bf16.mxu1 %v2923_v7 }
 0x2d3   :  { %2020 = vmatpush1.bf16.msra.mxu1 %v2921_v8 }
 0x2d4   :  { %2021 = vmatprep.subr.bf16.mxu1 %v2926_v9 }
 0x2d6   :  { %2007 = vmatmul.mubr.bf16.gmra.mrb[20].mxu1 %v3807_v37 }
 0x2d7   :  { %2022 = vmatpush1.bf16.msra.mxu1 %v2924_v10  ;;  %2049 = vmatprep.mubr.bf16.mxu1 %v3789_v20  ;;  %v2941_v20 = vld [vmem:[%s4040_s5 + $0x19c] ss:$28 sps:$4 sm:$0xff]   ;;  %s3103_s5 = smov [#allocation2]  }
 0x2d8   :  { %2023 = vmatprep.subr.bf16.mxu1 %v2929_v11  ;;  %s2292_s6 = sshll.u32 %s3103_s5, 4  ;;  %s2293_s6 = int_to_ptr.vmem [resolvable:$true] %s2292_s6 }
 0x2d9   :  { %s3078_s24 = scalar_lea.vmem %s2293_s6, 3584  ;;  %p3083_p1 = scmp.lt.s32.totalorder %s2293_s6, %s2293_s6 }
 0x2da   :  { %p3079_p0 = scmp.ne.s32.totalorder %s2293_s6, %s3078_s24  ;;  %p3084_p2 = scmp.lt.s32.totalorder %s3078_s24, %s3078_s24 }
 0x2db   :  { %2024 = vmatpush1.bf16.msra.mxu1 %v2927_v12 }
 0x2dc   :  { %2025 = vmatprep.subr.bf16.mxu1 %v2932_v13  ;;  %p3085_p3 = por %p3084_p2, %p3083_p1 }
 0x2de   :  { %p3086_p4 = pnand %p3085_p3, %p3079_p0 }
 0x2df   :  { %2026 = vmatpush1.bf16.msra.mxu1 %v2930_v14 }
 0x2e0   :  { %2027 = vmatprep.subr.bf16.mxu1 %v2935_v15 }
 0x2e3   :  { %2028 = vmatpush1.bf16.msra.mxu1 %v2933_v16 }
 0x2e4   :  { %2029 = vmatprep.subr.bf16.mxu1 %v2938_v17 }
 0x2e7   :  { %2030 = vmatpush1.bf16.msra.mxu1 %v2936_v18 }
 0x2e8   :  { %2031 = vmatprep.subr.bf16.mxu1 %v2941_v20 }
 0x2eb   :  { %2032 = vmatpush1.bf16.msra.mxu1 %v2939_v21 }
 0x2ec   :  { %2033 = vmatprep.subr.bf16.mxu1 %v2944_v22 }
 0x2ef   :  { %2034 = vmatpush1.bf16.msra.mxu1 %v2942_v23 }
 0x2f0   :  { %2035 = vmatprep.subr.bf16.mxu1 %v2947_v24 }
 0x2f3   :  { %2036 = vmatpush1.bf16.msra.mxu1 %v2945_v25 }
 0x2f4   :  { %2037 = vmatprep.subr.bf16.mxu1 %v2950_v26 }
 0x2f7   :  { %2038 = vmatpush1.bf16.msra.mxu1 %v2948_v27 }
 0x2f8   :  { %2039 = vmatprep.subr.bf16.mxu1 %v2953_v28 }
 0x2fb   :  { %2040 = vmatpush1.bf16.msra.mxu1 %v2951_v29 }
 0x2fc   :  { %2041 = vmatprep.subr.bf16.mxu1 %v2956_v30 }
 0x2ff   :  { %2042 = vmatpush1.bf16.msra.mxu1 %v2954_v31 }
 0x300   :  { %2043 = vmatprep.subr.bf16.mxu1 %v2959_v32 }
 0x303   :  { %2044 = vmatpush1.bf16.msra.mxu1 %v2957_v33 }
 0x304   :  { %2045 = vmatprep.subr.bf16.mxu1 %v2962_v34 }
 0x307   :  { %2046 = vmatpush1.bf16.msra.mxu1 %v2960_v35 }
 0x308   :  { %2047 = vmatprep.subr.bf16.mxu1 %v2965_v36 }
 0x30b   :  { %2048 = vmatpush1.bf16.msra.mxu1 %v2963_v39 }
 0x30e   :  { %2050 = vmatmul.mubr.bf16.vlgmr.msra.gmra.mrb[24].mxu1 %v3787_v19  ;;  %v1327_v19 = vrot.slane %v4003_v40, %v1326_v41 }
 0x30f   :  { %2059 = vmatprep.mubr.bf16.mxu1 %v3809_v38 }
 0x316   :  { %2060 = vmatmul.mubr.bf16.gmra.mrb[28].mxu1 %v3807_v37 }
 0x361   :  { %v1945_v44 = vpop.f32.mrb[8].mxu1  ;;  %v2563_v45 = vpop.f32.mrb[8].mxu0 }
 0x362   :  { %v1946_v38 = vadd.f32 %v1945_v44, %v1303_v42  ;;  %v1947_v46 = vpop.f32.mrb[9].mxu1  ;;  %v2564_v37 = vpop.f32.mrb[9].mxu0 }
 0x363   :  { %v1948_v47 = vadd.f32 %v1947_v46, %v1307_v43  ;;  %v2565_v48 = vadd.f32 %v2564_v37, %v2563_v45  ;;  %v1949_v49 = vpop.f32.mrb[10].mxu1  ;;  %v2566_v50 = vpop.f32.mrb[10].mxu0 }
 0x364   :  { %v2119_v51 = vsub.f32 0.0, %v1946_v38  ;;  %v1950_v52 = vadd.f32 %v1949_v49, %v1303_v42  ;;  %v1951_v53 = vpop.f32.mrb[11].mxu1  ;;  %v2567_v54 = vpop.f32.mrb[11].mxu0 }
 0x365   :  { %v2120_v55 = vsub.f32 0.0, %v1948_v47  ;;  %v2105_v59 = vadd.f32 %v2565_v48, %v1327_v19  ;;  %v1952_v56 = vadd.f32 %v1951_v53, %v1307_v43  ;;  %v2568_v57 = vadd.f32 %v2567_v54, %v2566_v50 }
 0x366   :  { %v2147_v61 = vmul.f32 1.442695, %v2119_v51  ;;  %v2126_v60 = vsub.f32 0.0, %v1950_v52 }
 0x367   :  { %v2149_v62 = vmul.f32 1.442695, %v2120_v55  ;;  %v2125_v63 = vsub.f32 0.0, %v2105_v59  ;;  %v2127_v0 = vsub.f32 0.0, %v1952_v56  ;;  %v2108_v1 = vadd.f32 %v2568_v57, %v1327_v19 }
 0x368   :  { %2966 = vpow2.f32 %v2147_v61  ;;  %v2161_v2 = vmul.f32 1.442695, %v2126_v60 }
 0x369   :  { %2968 = vpow2.f32 %v2149_v62  ;;  %v2159_v3 = vmul.f32 1.442695, %v2125_v63  ;;  %v2163_v4 = vmul.f32 1.442695, %v2127_v0  ;;  %v2132_v5 = vsub.f32 0.0, %v2108_v1  ;;  %v1955_v6 = vpop.f32.mrb[12].mxu1 }
 0x36a   :  { %2970 = vpow2.f32 %v2161_v2  ;;  %v1956_v7 = vadd.f32 %v1955_v6, %v1303_v42  ;;  %v2569_v8 = vpop.f32.mrb[12].mxu0  ;;  %v1957_v9 = vpop.f32.mrb[13].mxu1 }
 0x36b   :  { %2972 = vpow2.f32 %v2159_v3  ;;  %v2173_v10 = vmul.f32 1.442695, %v2132_v5  ;;  %v1958_v11 = vadd.f32 %v1957_v9, %v1307_v43  ;;  %v2570_v12 = vpop.f32.mrb[13].mxu0  ;;  %v1959_v13 = vpop.f32.mrb[14].mxu1  ;;  %v1310_v9 = vsub.s32 2, %v3658_v58 }
 0x36c   :  { %2974 = vpow2.f32 %v2163_v4  ;;  %v2133_v14 = vsub.f32 0.0, %v1956_v7  ;;  %v2571_v15 = vadd.f32 %v2570_v12, %v2569_v8  ;;  %v1960_v16 = vadd.f32 %v1959_v13, %v1303_v42  ;;  %v2572_v17 = vpop.f32.mrb[14].mxu0  ;;  %v1961_v18 = vpop.f32.mrb[15].mxu1 }
 0x36d   :  { %2976 = vpow2.f32 %v2173_v10  ;;  %v2134_v20 = vsub.f32 0.0, %v1958_v11  ;;  %v1962_v21 = vadd.f32 %v1961_v18, %v1307_v43  ;;  %v2573_v22 = vpop.f32.mrb[15].mxu0  ;;  %v1314_v10 = vsub.s32 3, %v3658_v58 }
 0x36e   :  { %v2175_v23 = vmul.f32 1.442695, %v2133_v14  ;;  %v2113_v24 = vadd.f32 %v2571_v15, %v1327_v19  ;;  %v2140_v25 = vsub.f32 0.0, %v1960_v16  ;;  %v2574_v26 = vadd.f32 %v2573_v22, %v2572_v17 }
 0x36f   :  { %v2177_v27 = vmul.f32 1.442695, %v2134_v20  ;;  %v2141_v28 = vsub.f32 0.0, %v1962_v21  ;;  %v1311_v11 = vrot.slane %v4003_v40, %v1310_v9  ;;  %v1315_v12 = vrot.slane %v4003_v40, %v1314_v10 }
 0x370   :  { %2978 = vpow2.f32 %v2175_v23  ;;  %v2139_v29 = vsub.f32 0.0, %v2113_v24  ;;  %v2189_v30 = vmul.f32 1.442695, %v2140_v25  ;;  %v2116_v31 = vadd.f32 %v2574_v26, %v1327_v19 }
 0x371   :  { %2980 = vpow2.f32 %v2177_v27  ;;  %v2191_v32 = vmul.f32 1.442695, %v2141_v28 }
 0x372   :  { %v2967_v33 = vpop.eup %2966  ;;  %v2187_v34 = vmul.f32 1.442695, %v2139_v29  ;;  %2982 = vpow2.f32 %v2189_v30  ;;  %v2146_v39 = vsub.f32 0.0, %v2116_v31 }
 0x373   :  { %v2969_v35 = vpop.eup %2968  ;;  %v2203_v36 = vadd.f32 1.0, %v2967_v33  ;;  %2984 = vpow2.f32 %v2191_v32 }
 0x374   :  { %v2971_v41 = vpop.eup %2970  ;;  %v2204_v42 = vadd.f32 1.0, %v2969_v35  ;;  %2986 = vpow2.f32 %v2187_v34  ;;  %v2201_v37 = vmul.f32 1.442695, %v2146_v39 }
 0x375   :  { %v2973_v43 = vpop.eup %2972  ;;  %2988 = vrcp.f32 %v2203_v36  ;;  %v2210_v44 = vadd.f32 1.0, %v2971_v41 }
 0x376   :  { %v2975_v45 = vpop.eup %2974  ;;  %2990 = vrcp.f32 %v2204_v42  ;;  %v2209_v38 = vadd.f32 1.0, %v2973_v43 }
 0x377   :  { %v2977_v46 = vpop.eup %2976  ;;  %2992 = vrcp.f32 %v2210_v44  ;;  %v2211_v19 = vadd.f32 1.0, %v2975_v45 }
 0x378   :  { %2994 = vrcp.f32 %v2209_v38  ;;  %v2216_v47 = vadd.f32 1.0, %v2977_v46 }
 0x379   :  { %2996 = vrcp.f32 %v2211_v19 }
 0x37a   :  { %v2979_v48 = vpop.eup %2978  ;;  %2998 = vrcp.f32 %v2216_v47 }
 0x37b   :  { %v2981_v49 = vpop.eup %2980  ;;  %v2217_v50 = vadd.f32 1.0, %v2979_v48  ;;  %3000 = vpow2.f32 %v2201_v37 }
 0x37c   :  { %v2983_v51 = vpop.eup %2982  ;;  %v2218_v52 = vadd.f32 1.0, %v2981_v49 }
 0x37d   :  { %v2985_v53 = vpop.eup %2984  ;;  %3002 = vrcp.f32 %v2217_v50  ;;  %v2224_v54 = vadd.f32 1.0, %v2983_v51 }
 0x37e   :  { %v2987_v55 = vpop.eup %2986  ;;  %3004 = vrcp.f32 %v2218_v52  ;;  %v2225_v59 = vadd.f32 1.0, %v2985_v53 }
 0x37f   :  { %v2989_v56 = vpop.eup %2988  ;;  %v2223_v57 = vadd.f32 1.0, %v2987_v55  ;;  %3006 = vrcp.f32 %v2224_v54 }
 0x380   :  { %v2991_v61 = vpop.eup %2990  ;;  %2259 = vst [vmem:[#allocation2] sm:$0xff] %v2989_v56  ;;  %3008 = vrcp.f32 %v2225_v59 }
 0x381   :  { %v2993_v60 = vpop.eup %2992  ;;  %2260 = vst [vmem:[#allocation2 + $0x8] sm:$0xff] %v2991_v61  ;;  %3010 = vrcp.f32 %v2223_v57 }
 0x382   :  { %v2995_v62 = vpop.eup %2994  ;;  %2266 = vst [vmem:[#allocation2 + $0x38] sm:$0xff] %v2993_v60 }
 0x383   :  { %v2997_v63 = vpop.eup %2996  ;;  %2265 = vst.msk [vmem:[#allocation2 + $0x30] sm:$0xff] %vm670_vm0, %v2995_v62 }
 0x384   :  { %v2999_v0 = vpop.eup %2998  ;;  %2267 = vst [vmem:[#allocation2 + $0x40] sm:$0xff] %v2997_v63 }
 0x385   :  { %v3001_v1 = vpop.eup %3000  ;;  %2272 = vst.msk [vmem:[#allocation2 + $0x68] sm:$0xff] %vm670_vm0, %v2999_v0 }
 0x386   :  { %v2230_v2 = vadd.f32 1.0, %v3001_v1 }
 0x387   :  { %v3003_v3 = vpop.eup %3002 }
 0x388   :  { %v3005_v4 = vpop.eup %3004  ;;  %2273 = vst [vmem:[#allocation2 + $0x70] sm:$0xff] %v3003_v3  ;;  %3012 = vrcp.f32 %v2230_v2 }
 0x389   :  { %v3007_v5 = vpop.eup %3006  ;;  %2274 = vst [vmem:[#allocation2 + $0x78] sm:$0xff] %v3005_v4 }
 0x38a   :  { %v3009_v6 = vpop.eup %3008  ;;  %2280 = vst [vmem:[#allocation2 + $0xa8] sm:$0xff] %v3007_v5 }
 0x38b   :  { %v3011_v7 = vpop.eup %3010  ;;  %2281 = vst [vmem:[#allocation2 + $0xb0] sm:$0xff] %v3009_v6 }
 0x38c   :  { %2279 = vst.msk [vmem:[#allocation2 + $0xa0] sm:$0xff] %vm670_vm0, %v3011_v7  ;;  %v1318_v7 = vsub.s32 4, %v3658_v58 }
 0x38e   :  { %v1319_v9 = vrot.slane %v4003_v40, %v1318_v7 }
 0x392   :  { %v3013_v8 = vpop.eup %3012 }
 0x393   :  { %2286 = vst.msk [vmem:[#allocation2 + $0xd8] sm:$0xff] %vm670_vm0, %v3013_v8  ;;  %v1322_v8 = vsub.s32 5, %v3658_v58 }
 0x395   :  { %v1323_v10 = vrot.slane %v4003_v40, %v1322_v8 }
 0x3a1   :  { %v1998_v13 = vpop.f32.mrb[16].mxu1 }
 0x3a2   :  { %v1999_v14 = vadd.f32 %v1998_v13, %v1311_v11  ;;  %v2000_v15 = vpop.f32.mrb[17].mxu1 }
 0x3a3   :  { %v2001_v16 = vadd.f32 %v2000_v15, %v1315_v12  ;;  %v2002_v17 = vpop.f32.mrb[18].mxu1 }
 0x3a4   :  { %v2121_v18 = vsub.f32 0.0, %v1999_v14  ;;  %v2003_v20 = vadd.f32 %v2002_v17, %v1311_v11  ;;  %v2004_v21 = vpop.f32.mrb[19].mxu1 }
 0x3a5   :  { %v2122_v22 = vsub.f32 0.0, %v2001_v16  ;;  %v2005_v23 = vadd.f32 %v2004_v21, %v1315_v12 }
 0x3a6   :  { %v2151_v24 = vmul.f32 1.442695, %v2121_v18  ;;  %v2128_v25 = vsub.f32 0.0, %v2003_v20 }
 0x3a7   :  { %v2153_v26 = vmul.f32 1.442695, %v2122_v22  ;;  %v2129_v27 = vsub.f32 0.0, %v2005_v23 }
 0x3a8   :  { %3014 = vpow2.f32 %v2151_v24  ;;  %v2165_v28 = vmul.f32 1.442695, %v2128_v25 }
 0x3a9   :  { %3016 = vpow2.f32 %v2153_v26  ;;  %v2167_v29 = vmul.f32 1.442695, %v2129_v27  ;;  %v2008_v30 = vpop.f32.mrb[20].mxu1 }
 0x3aa   :  { %3018 = vpow2.f32 %v2165_v28  ;;  %v2009_v31 = vadd.f32 %v2008_v30, %v1311_v11  ;;  %v2010_v32 = vpop.f32.mrb[21].mxu1 }
 0x3ab   :  { %3020 = vpow2.f32 %v2167_v29  ;;  %v2011_v33 = vadd.f32 %v2010_v32, %v1315_v12  ;;  %v2012_v34 = vpop.f32.mrb[22].mxu1 }
 0x3ac   :  { %v2135_v35 = vsub.f32 0.0, %v2009_v31  ;;  %v2013_v36 = vadd.f32 %v2012_v34, %v1311_v11  ;;  %v2014_v39 = vpop.f32.mrb[23].mxu1 }
 0x3ad   :  { %v2136_v41 = vsub.f32 0.0, %v2011_v33  ;;  %v2015_v42 = vadd.f32 %v2014_v39, %v1315_v12 }
 0x3ae   :  { %v2179_v43 = vmul.f32 1.442695, %v2135_v35  ;;  %v2142_v44 = vsub.f32 0.0, %v2013_v36 }
 0x3af   :  { %v2181_v45 = vmul.f32 1.442695, %v2136_v41  ;;  %v2143_v38 = vsub.f32 0.0, %v2015_v42 }
 0x3b0   :  { %3022 = vpow2.f32 %v2179_v43  ;;  %v2193_v46 = vmul.f32 1.442695, %v2142_v44 }
 0x3b1   :  { %3024 = vpow2.f32 %v2181_v45  ;;  %v2195_v19 = vmul.f32 1.442695, %v2143_v38 }
 0x3b2   :  { %v3015_v37 = vpop.eup %3014  ;;  %3026 = vpow2.f32 %v2193_v46 }
 0x3b3   :  { %v3017_v47 = vpop.eup %3016  ;;  %v2205_v48 = vadd.f32 1.0, %v3015_v37  ;;  %3028 = vpow2.f32 %v2195_v19 }
 0x3b4   :  { %v3019_v49 = vpop.eup %3018  ;;  %v2206_v50 = vadd.f32 1.0, %v3017_v47 }
 0x3b5   :  { %v3021_v51 = vpop.eup %3020  ;;  %3030 = vrcp.f32 %v2205_v48  ;;  %v2212_v52 = vadd.f32 1.0, %v3019_v49 }
 0x3b6   :  { %3032 = vrcp.f32 %v2206_v50  ;;  %v2213_v53 = vadd.f32 1.0, %v3021_v51 }
 0x3b7   :  { %3034 = vrcp.f32 %v2212_v52 }
 0x3b8   :  { %3036 = vrcp.f32 %v2213_v53 }
 0x3ba   :  { %v3023_v54 = vpop.eup %3022 }
 0x3bb   :  { %v3025_v55 = vpop.eup %3024  ;;  %v2219_v59 = vadd.f32 1.0, %v3023_v54 }
 0x3bc   :  { %v3027_v56 = vpop.eup %3026  ;;  %v2220_v57 = vadd.f32 1.0, %v3025_v55 }
 0x3bd   :  { %v3029_v61 = vpop.eup %3028  ;;  %3038 = vrcp.f32 %v2219_v59  ;;  %v2226_v60 = vadd.f32 1.0, %v3027_v56 }
 0x3be   :  { %3040 = vrcp.f32 %v2220_v57  ;;  %v2227_v62 = vadd.f32 1.0, %v3029_v61 }
 0x3bf   :  { %v3031_v63 = vpop.eup %3030  ;;  %3042 = vrcp.f32 %v2226_v60 }
 0x3c0   :  { %v3033_v0 = vpop.eup %3032  ;;  %2261 = vst [vmem:[#allocation2 + $0x10] sm:$0xff] %v3031_v63  ;;  %3044 = vrcp.f32 %v2227_v62 }
 0x3c1   :  { %v3035_v1 = vpop.eup %3034  ;;  %2262 = vst [vmem:[#allocation2 + $0x18] sm:$0xff] %v3033_v0 }
 0x3c2   :  { %v3037_v2 = vpop.eup %3036  ;;  %2268 = vst [vmem:[#allocation2 + $0x48] sm:$0xff] %v3035_v1 }
 0x3c3   :  { %2269 = vst [vmem:[#allocation2 + $0x50] sm:$0xff] %v3037_v2 }
 0x3c7   :  { %v3039_v3 = vpop.eup %3038 }
 0x3c8   :  { %v3041_v4 = vpop.eup %3040  ;;  %2275 = vst [vmem:[#allocation2 + $0x80] sm:$0xff] %v3039_v3 }
 0x3c9   :  { %v3043_v5 = vpop.eup %3042  ;;  %2276 = vst [vmem:[#allocation2 + $0x88] sm:$0xff] %v3041_v4 }
 0x3ca   :  { %v3045_v6 = vpop.eup %3044  ;;  %2282 = vst [vmem:[#allocation2 + $0xb8] sm:$0xff] %v3043_v5 }
 0x3cb   :  { %2283 = vst [vmem:[#allocation2 + $0xc0] sm:$0xff] %v3045_v6 }
 0x3e1   :  { %v2051_v11 = vpop.f32.mrb[24].mxu1 }
 0x3e2   :  { %v2052_v12 = vadd.f32 %v2051_v11, %v1319_v9  ;;  %v2053_v13 = vpop.f32.mrb[25].mxu1 }
 0x3e3   :  { %v2054_v14 = vadd.f32 %v2053_v13, %v1323_v10  ;;  %v2055_v15 = vpop.f32.mrb[26].mxu1 }
 0x3e4   :  { %v2123_v16 = vsub.f32 0.0, %v2052_v12  ;;  %v2056_v17 = vadd.f32 %v2055_v15, %v1319_v9  ;;  %v2057_v18 = vpop.f32.mrb[27].mxu1 }
 0x3e5   :  { %v2124_v20 = vsub.f32 0.0, %v2054_v14  ;;  %v2058_v21 = vadd.f32 %v2057_v18, %v1323_v10 }
 0x3e6   :  { %v2155_v22 = vmul.f32 1.442695, %v2123_v16  ;;  %v2130_v23 = vsub.f32 0.0, %v2056_v17 }
 0x3e7   :  { %v2157_v24 = vmul.f32 1.442695, %v2124_v20  ;;  %v2131_v25 = vsub.f32 0.0, %v2058_v21 }
 0x3e8   :  { %3046 = vpow2.f32 %v2155_v22  ;;  %v2169_v58 = vmul.f32 1.442695, %v2130_v23 }
 0x3e9   :  { %3048 = vpow2.f32 %v2157_v24  ;;  %v2171_v26 = vmul.f32 1.442695, %v2131_v25  ;;  %v2061_v27 = vpop.f32.mrb[28].mxu1 }
 0x3ea   :  { %3050 = vpow2.f32 %v2169_v58  ;;  %v2062_v40 = vadd.f32 %v2061_v27, %v1319_v9  ;;  %v2063_v28 = vpop.f32.mrb[29].mxu1 }
 0x3eb   :  { %3052 = vpow2.f32 %v2171_v26  ;;  %v2064_v29 = vadd.f32 %v2063_v28, %v1323_v10  ;;  %v2065_v30 = vpop.f32.mrb[30].mxu1 }
 0x3ec   :  { %v2137_v31 = vsub.f32 0.0, %v2062_v40  ;;  %v2066_v32 = vadd.f32 %v2065_v30, %v1319_v9  ;;  %v2067_v33 = vpop.f32.mrb[31].mxu1 }
 0x3ed   :  { %v2138_v34 = vsub.f32 0.0, %v2064_v29  ;;  %v2068_v35 = vadd.f32 %v2067_v33, %v1323_v10 }
 0x3ee   :  { %v2183_v36 = vmul.f32 1.442695, %v2137_v31  ;;  %v2144_v39 = vsub.f32 0.0, %v2066_v32 }
 0x3ef   :  { %v2185_v41 = vmul.f32 1.442695, %v2138_v34  ;;  %v2145_v42 = vsub.f32 0.0, %v2068_v35 }
 0x3f0   :  { %3054 = vpow2.f32 %v2183_v36  ;;  %v2197_v43 = vmul.f32 1.442695, %v2144_v39 }
 0x3f1   :  { %3056 = vpow2.f32 %v2185_v41  ;;  %v2199_v44 = vmul.f32 1.442695, %v2145_v42 }
 0x3f2   :  { %v3047_v45 = vpop.eup %3046  ;;  %3058 = vpow2.f32 %v2197_v43 }
 0x3f3   :  { %v3049_v38 = vpop.eup %3048  ;;  %v2207_v46 = vadd.f32 1.0, %v3047_v45  ;;  %3060 = vpow2.f32 %v2199_v44 }
 0x3f4   :  { %v3051_v19 = vpop.eup %3050  ;;  %v2208_v37 = vadd.f32 1.0, %v3049_v38 }
 0x3f5   :  { %v3053_v47 = vpop.eup %3052  ;;  %3062 = vrcp.f32 %v2207_v46  ;;  %v2214_v48 = vadd.f32 1.0, %v3051_v19 }
 0x3f6   :  { %3064 = vrcp.f32 %v2208_v37  ;;  %v2215_v49 = vadd.f32 1.0, %v3053_v47 }
 0x3f7   :  { %3066 = vrcp.f32 %v2214_v48 }
 0x3f8   :  { %3068 = vrcp.f32 %v2215_v49 }
 0x3fa   :  { %v3055_v50 = vpop.eup %3054 }
 0x3fb   :  { %v3057_v51 = vpop.eup %3056  ;;  %v2221_v52 = vadd.f32 1.0, %v3055_v50 }
 0x3fc   :  { %v3059_v53 = vpop.eup %3058  ;;  %v2222_v54 = vadd.f32 1.0, %v3057_v51 }
 0x3fd   :  { %v3061_v55 = vpop.eup %3060  ;;  %3070 = vrcp.f32 %v2221_v52  ;;  %v2228_v59 = vadd.f32 1.0, %v3059_v53 }
 0x3fe   :  { %3072 = vrcp.f32 %v2222_v54  ;;  %v2229_v56 = vadd.f32 1.0, %v3061_v55 }
 0x3ff   :  { %v3063_v57 = vpop.eup %3062  ;;  %3074 = vrcp.f32 %v2228_v59 }
 0x400   :  { %v3065_v61 = vpop.eup %3064  ;;  %2263 = vst [vmem:[#allocation2 + $0x20] sm:$0xff] %v3063_v57  ;;  %3076 = vrcp.f32 %v2229_v56 }
 0x401   :  { %v3067_v60 = vpop.eup %3066  ;;  %2264 = vst [vmem:[#allocation2 + $0x28] sm:$0xff] %v3065_v61 }
 0x402   :  { %v3069_v62 = vpop.eup %3068  ;;  %2270 = vst [vmem:[#allocation2 + $0x58] sm:$0xff] %v3067_v60 }
 0x403   :  { %2271 = vst [vmem:[#allocation2 + $0x60] sm:$0xff] %v3069_v62 }
 0x407   :  { %v3071_v63 = vpop.eup %3070 }
 0x408   :  { %v3073_v0 = vpop.eup %3072  ;;  %2277 = vst [vmem:[#allocation2 + $0x90] sm:$0xff] %v3071_v63 }
 0x409   :  { %v3075_v1 = vpop.eup %3074  ;;  %2278 = vst [vmem:[#allocation2 + $0x98] sm:$0xff] %v3073_v0 }
 0x40a   :  { %v3077_v2 = vpop.eup %3076  ;;  %2284 = vst [vmem:[#allocation2 + $0xc8] sm:$0xff] %v3075_v1 }
 0x40b   :  { %2285 = vst [vmem:[#allocation2 + $0xd0] sm:$0xff] %v3077_v2 }
 0x40c   :  { %3089 = shalt.err (!%p3086_p4)
}
 0x40d   :  { %s3090_s26 = scalar_lea.hbm %s4042_s7, 3584 }
 0x40e   :  { %p3091_p5 = scmp.ne.s32.totalorder %s4042_s7, %s3090_s26  ;;  %p3094_p6 = scmp.lt.u32.totalorder %s3090_s26, %s4042_s7 }
 0x410   :  { %p3096_p7 = pnand %p3094_p6, %p3091_p5 }
 0x412   :  { %3099 = shalt.err (!%p3096_p7)
}
 0x413   :  { %s3104_s8 = smov 896   ;;  %s3105_s9 = smov 56  }
 0x414   :  { %2298 = dma.vmem_to_hbm [thread:$0]  %s2293_s6, 3584, %s4042_s7, [#allocation3], %s3104_s8, %s3104_s8, %s3105_s9  }
 0x415   :  { %3100 = dma.done.wait [#allocation3], 3584  }
 0x416   :  { %3101 = vsyncadd [#allocation3], 4294963712 }
 0x417   :  { %2302 = vsyncpa [#allocation3], 1 }

</bundles_post_ra>
